<compile_context>
chip_gen: v7x
topology: tpu7x:2x2x1
jax: 0.10.0
libtpu: 0.0.40
codegen_flags: <defaults>
</compile_context>

<pallas_src>
import functools

import jax
import jax.numpy as jnp
from jax.experimental import pallas as pl
from jax.experimental.pallas import tpu as pltpu

_BN_EPS = 1e-5
_LANE = 128
_ROW_ALIGN = 16  # bf16 sublane packing -> keep row tiles multiples of 16


def _round_up(x, m):
    return (x + m - 1) // m * m


# ------------------------------ Pallas kernels ------------------------------ #
def _conv_stats_kernel(xcol_ref, w_ref, y_ref, psum_ref, psq_ref):
    """One row tile of the conv-as-matmul (bf16 in, f32 accumulate on the MXU)
    plus per-channel partial sum / sum-of-squares for BatchNorm."""
    acc = jnp.dot(xcol_ref[...], w_ref[...],
                  preferred_element_type=jnp.float32)            # (TR, Cp) f32
    y_ref[...] = acc.astype(y_ref.dtype)
    psum_ref[0, :, :] = jnp.sum(acc, axis=0, keepdims=True)       # (1, Cp)
    psq_ref[0, :, :] = jnp.sum(acc * acc, axis=0, keepdims=True)  # (1, Cp)


def _bn_relu_kernel(y_ref, scale_ref, shift_ref, o_ref):
    """Fused normalize + affine + ReLU in a single traversal of the tile."""
    y = y_ref[...].astype(jnp.float32)
    o_ref[...] = jnp.maximum(y * scale_ref[...] + shift_ref[...], 0.0).astype(o_ref.dtype)


# --------------------------------- JAX glue --------------------------------- #
def _im2col_nhwc(x):
    """(N,H,W,C) -> (N*H*W, 9*C) patches for a 3x3, stride-1, padding-1 conv.
    Column order is (ky, kx, cin), matching the weight matrix below."""
    N, H, W, C = x.shape
    xp = jnp.pad(x, ((0, 0), (1, 1), (1, 1), (0, 0)))
    cols = [xp[:, dy:dy + H, dx:dx + W, :] for dy in range(3) for dx in range(3)]
    return jnp.concatenate(cols, axis=-1).reshape(N * H * W, 9 * C)


def _pick_row_block(R, K_pad, C_pad, budget_bytes=24 << 20, max_rows=4096):
    """Largest row tile whose double-buffered working set fits a conservative
    VMEM budget (safe on v5e/v6e 128 MiB and v7x 64 MiB)."""
    per_row = 2 * (K_pad * 2) + 2 * (C_pad * 4)   # dbl-buffered xcol(bf16) + y(f32)
    fixed = 2 * (K_pad * C_pad * 2)               # resident bf16 weights (2 bufs worst case)
    tr = (budget_bytes - fixed) // per_row
    tr = min(tr, max_rows, _round_up(R, _ROW_ALIGN))
    tr = max(_ROW_ALIGN, (tr // _ROW_ALIGN) * _ROW_ALIGN)
    return int(tr)


def _conv_bn_relu(x_nhwc, w_oihw, gamma, beta, *, out_dtype, row_block=None):
    """3x3 conv (padding=1) -> BatchNorm2d (training batch stats) -> ReLU."""
    N, H, W, Cin = x_nhwc.shape
    Cout = w_oihw.shape[0]
    R = N * H * W
    K = 9 * Cin
    K_pad = _round_up(K, _LANE)        # lane-dense K (v5e MXU feed)
    C_pad = _round_up(Cout, _LANE)     # lane-dense output channels

    if row_block is None:
        row_block = _pick_row_block(R, K_pad, C_pad)
    R_pad = _round_up(R, row_block)
    G = R_pad // row_block

    # im2col in bf16 (data-movement glue); zero-pad rows / K to tile boundaries.
    xcol = _im2col_nhwc(x_nhwc.astype(jnp.bfloat16))
    xcol = jnp.pad(xcol, ((0, R_pad - R), (0, K_pad - K)))

    # PyTorch weight (Cout, Cin, kh, kw) -> (kh, kw, Cin, Cout) -> (9*Cin, Cout)
    wmat = jnp.transpose(w_oihw, (2, 3, 1, 0)).reshape(K, Cout)
    wmat = jnp.pad(wmat, ((0, K_pad - K), (0, C_pad - Cout))).astype(jnp.bfloat16)

    # ---------------- pass 1: conv matmul + partial BN statistics -------------
    vmem1 = (2 * row_block * K_pad * 2 + 2 * K_pad * C_pad * 2
             + 2 * row_block * C_pad * 4 + 8 * C_pad * 4 + (1 << 20))
    y, psum, psq = pl.pallas_call(
        _conv_stats_kernel,
        grid=(G,),
        in_specs=[
            pl.BlockSpec((row_block, K_pad), lambda i: (i, 0)),
            pl.BlockSpec((K_pad, C_pad), lambda i: (0, 0)),   # resident weights
        ],
        out_specs=[
            pl.BlockSpec((row_block, C_pad), lambda i: (i, 0)),
            pl.BlockSpec((1, 1, C_pad), lambda i: (i, 0, 0)),
            pl.BlockSpec((1, 1, C_pad), lambda i: (i, 0, 0)),
        ],
        out_shape=[
            jax.ShapeDtypeStruct((R_pad, C_pad), jnp.float32),
            jax.ShapeDtypeStruct((G, 1, C_pad), jnp.float32),
            jax.ShapeDtypeStruct((G, 1, C_pad), jnp.float32),
        ],
        compiler_params=pltpu.CompilerParams(
            dimension_semantics=("parallel",),
            vmem_limit_bytes=int(min(max(2 * vmem1, 8 << 20), 48 << 20))),
        cost_estimate=pl.CostEstimate(
            flops=2 * R_pad * K_pad * C_pad,
            transcendentals=0,
            bytes_accessed=(R_pad * K_pad * 2 + K_pad * C_pad * 2
                            + R_pad * C_pad * 4 + 2 * G * C_pad * 4)),
    )(xcol, wmat)

    # ------------- fold global BN stats into per-channel scale/shift ----------
    total = jnp.sum(psum, axis=(0, 1))                     # (C_pad,)
    total_sq = jnp.sum(psq, axis=(0, 1))                   # (C_pad,)
    mean = total / R                                       # true (unpadded) count
    var = jnp.maximum(total_sq / R - mean * mean, 0.0)     # biased variance
    inv = jax.lax.rsqrt(var + _BN_EPS)
    g = jnp.pad(gamma.astype(jnp.float32), (0, C_pad - Cout))
    b = jnp.pad(beta.astype(jnp.float32), (0, C_pad - Cout))
    scale = (g * inv).reshape(1, C_pad)
    shift = (b - mean * g * inv).reshape(1, C_pad)

    # ---------------- pass 2: normalize + affine + ReLU -----------------------
    out_itemsize = jnp.dtype(out_dtype).itemsize
    vmem2 = (2 * row_block * C_pad * 4 + 2 * row_block * C_pad * out_itemsize
             + 8 * C_pad * 4 + (1 << 20))
    out = pl.pallas_call(
        _bn_relu_kernel,
        grid=(G,),
        in_specs=[
            pl.BlockSpec((row_block, C_pad), lambda i: (i, 0)),
            pl.BlockSpec((1, C_pad), lambda i: (0, 0)),
            pl.BlockSpec((1, C_pad), lambda i: (0, 0)),
        ],
        out_specs=pl.BlockSpec((row_block, C_pad), lambda i: (i, 0)),
        out_shape=jax.ShapeDtypeStruct((R_pad, C_pad), out_dtype),
        compiler_params=pltpu.CompilerParams(
            dimension_semantics=("parallel",),
            vmem_limit_bytes=int(min(max(2 * vmem2, 8 << 20), 48 << 20))),
        cost_estimate=pl.CostEstimate(
            flops=3 * R_pad * C_pad,
            transcendentals=0,
            bytes_accessed=(R_pad * C_pad * 4 + R_pad * C_pad * out_itemsize
                            + 2 * C_pad * 4)),
    )(y, scale, shift)

    return out[:R, :Cout].reshape(N, H, W, Cout)


@functools.partial(jax.jit, static_argnames=("row_block",))
def double_conv(x_nchw, params, *, row_block=None):
    """Forward pass of DoubleConv (norm='batch_norm', module in training mode)."""
    x = jnp.transpose(x_nchw, (0, 2, 3, 1))                    # NCHW -> NHWC once
    # Conv biases are skipped: a per-channel bias before training-mode
    # BatchNorm is exactly cancelled by the mean subtraction (beta carries it).
    h = _conv_bn_relu(x, params["w1"], params["g1"], params["beta1"],
                      out_dtype=jnp.bfloat16, row_block=row_block)   # stays NHWC/bf16
    y = _conv_bn_relu(h, params["w2"], params["g2"], params["beta2"],
                      out_dtype=jnp.float32, row_block=row_block)
    return jnp.transpose(y, (0, 3, 1, 2))                      # NHWC -> NCHW


# ----------------------------- pure-JAX references --------------------------- #
def _ref_double_conv(x, params, *, quantize):
    """quantize=False: faithful f32 module semantics (incl. conv2 bias).
    quantize=True : same bf16 input/weight rounding the kernel performs."""
    def conv(x, w, b):
        if quantize:
            x = x.astype(jnp.bfloat16).astype(jnp.float32)
            w = w.astype(jnp.bfloat16).astype(jnp.float32)
        y = jax.lax.conv_general_dilated(
            x, w, (1, 1), ((1, 1), (1, 1)),
            dimension_numbers=("NCHW", "OIHW", "NCHW"),
            precision=jax.lax.Precision.HIGHEST)
        if b is not None:
            y = y + b[None, :, None, None]
        return y

    def bn_relu(y, g, bt):
        m = y.mean(axis=(0, 2, 3), keepdims=True)
        v = ((y - m) ** 2).mean(axis=(0, 2, 3), keepdims=True)
        z = (y - m) * jax.lax.rsqrt(v + _BN_EPS)
        return jnp.maximum(z * g[None, :, None, None] + bt[None, :, None, None], 0.0)

    h = bn_relu(conv(x, params["w1"], None), params["g1"], params["beta1"])
    if quantize:
        h = h.astype(jnp.bfloat16).astype(jnp.float32)   # kernel stores h in bf16
    return bn_relu(conv(h, params["w2"], params["b2"]), params["g2"], params["beta2"])


# ------------------------------------ main ----------------------------------- #
if __name__ == "__main__":
    N, Cin, H, W = 2, 4, 16, 16
    Cmid = Cout = 8                      # DoubleConv(in=4, out=8) -> mid=8

    key = jax.random.PRNGKey(0)
    k1, k2, k3, k4, k5, k6, k7, kx = jax.random.split(key, 8)

    params = {
        # conv1: Conv2d(4, 8, 3, padding=1, bias=False)
        "w1": 0.1 * jax.random.normal(k1, (Cmid, Cin, 3, 3), jnp.float32),
        # norm1: BatchNorm2d(8, affine=True)
        "g1": 1.0 + 0.1 * jax.random.normal(k2, (Cmid,), jnp.float32),
        "beta1": 0.1 * jax.random.normal(k3, (Cmid,), jnp.float32),
        # conv2: Conv2d(8, 8, 3, padding=1, bias=True)  (bias cancelled by BN)
        "w2": 0.1 * jax.random.normal(k4, (Cout, Cmid, 3, 3), jnp.float32),
        "b2": 0.1 * jax.random.normal(k5, (Cout,), jnp.float32),
        # norm2: BatchNorm2d(8, affine=True)
        "g2": 1.0 + 0.1 * jax.random.normal(k6, (Cout,), jnp.float32),
        "beta2": 0.1 * jax.random.normal(k7, (Cout,), jnp.float32),
    }
    x = jax.random.normal(kx, (N, Cin, H, W), jnp.float32)

    # default (adaptive) row tile
    out = jax.block_until_ready(double_conv(x, params))
    assert out.shape == (N, Cout, H, W), out.shape

    ref_q = jax.block_until_ready(_ref_double_conv(x, params, quantize=True))
    ref_f = jax.block_until_ready(_ref_double_conv(x, params, quantize=False))
    err_q = float(jnp.max(jnp.abs(out - ref_q)))   # same bf16 arithmetic -> tight
    err_f = float(jnp.max(jnp.abs(out - ref_f)))   # vs full-f32 module semantics
    assert err_q < 2e-2, f"bf16-matched reference mismatch: {err_q}"
    assert err_f < 1e-1, f"f32 reference mismatch: {err_f}"

    # small row tile -> multi-block grid, exercises the partial-stat reduction
    out_tiled = jax.block_until_ready(double_conv(x, params, row_block=128))
    err_t = float(jnp.max(jnp.abs(out_tiled - ref_q)))
    assert err_t < 2e-2, f"tiled-stats path mismatch: {err_t}"

    print("KERNEL_OK")
</pallas_src>

<mosaic_0001>
module attributes {stable_mosaic.version = 11 : i64} {
  func.func @_conv_stats_kernel(%arg0: i32, %arg1: memref<512x128xbf16, #tpu.memory_space<vmem>>, %arg2: memref<128x128xbf16, #tpu.memory_space<vmem>>, %arg3: memref<512x128xf32, #tpu.memory_space<vmem>>, %arg4: memref<1x1x128xf32, #tpu.memory_space<vmem>>, %arg5: memref<1x1x128xf32, #tpu.memory_space<vmem>>) attributes {dimension_semantics = [#tpu.dimension_semantics<parallel>], iteration_bounds = array<i64: 1>, scalar_prefetch = 0 : i64, scratch_operands = 0 : i64, tpu.core_type = #tpu.core_type<tc>, window_params = [{transform_indices = @transform_0, window_bounds = array<i64: 512, 128>}, {pipeline_mode = #tpu.pipeline_mode<synchronous>, transform_indices = @transform_1, window_bounds = array<i64: 128, 128>}, {transform_indices = @transform_2, window_bounds = array<i64: 512, 128>}, {transform_indices = @transform_3, window_bounds = array<i64: 1, 1, 128>}, {transform_indices = @transform_4, window_bounds = array<i64: 1, 1, 128>}]} {
    %c0 = arith.constant 0 : index
    %c0_0 = arith.constant 0 : index
    %0 = vector.load %arg1[%c0, %c0_0] : memref<512x128xbf16, #tpu.memory_space<vmem>>, vector<512x128xbf16>
    %c0_1 = arith.constant 0 : index
    %c0_2 = arith.constant 0 : index
    %1 = vector.load %arg2[%c0_1, %c0_2] : memref<128x128xbf16, #tpu.memory_space<vmem>>, vector<128x128xbf16>
    %cst = arith.constant dense<0.000000e+00> : vector<512x128xf32>
    %2 = tpu.matmul %0, %1, %cst {dimension_numbers = #tpu.dot_dimension_numbers<[1], [0], [0], [1], [0, 0, 1, 1], [], []>} : vector<512x128xbf16>, vector<128x128xbf16>, vector<512x128xf32> -> vector<512x128xf32>
    %c0_3 = arith.constant 0 : index
    %c0_4 = arith.constant 0 : index
    %3 = vector.load %arg3[%c0_3, %c0_4] : memref<512x128xf32, #tpu.memory_space<vmem>>, vector<512x128xf32>
    tpu.vector_store %arg3[%c0_3, %c0_4], %2 {strides = array<i32>} : memref<512x128xf32, #tpu.memory_space<vmem>>, vector<512x128xf32>,
    %cst_5 = arith.constant dense<0.000000e+00> : vector<128xf32>
    %4 = vector.multi_reduction <add>, %2, %cst_5 [0] : vector<512x128xf32> to vector<128xf32>
    %5 = vector.shape_cast %4 : vector<128xf32> to vector<1x128xf32>
    %c0_6 = arith.constant 0 : index
    %c0_7 = arith.constant 0 : index
    %c0_8 = arith.constant 0 : index
    %6 = vector.load %arg4[%c0_6, %c0_7, %c0_8] : memref<1x1x128xf32, #tpu.memory_space<vmem>>, vector<1x1x128xf32>
    %7 = vector.shape_cast %6 : vector<1x1x128xf32> to vector<1x128xf32>
    %8 = vector.shape_cast %5 : vector<1x128xf32> to vector<1x1x128xf32>
    tpu.vector_store %arg4[%c0_6, %c0_7, %c0_8], %8 {strides = array<i32>} : memref<1x1x128xf32, #tpu.memory_space<vmem>>, vector<1x1x128xf32>,
    %9 = arith.mulf %2, %2 : vector<512x128xf32>
    %cst_9 = arith.constant dense<0.000000e+00> : vector<128xf32>
    %10 = vector.multi_reduction <add>, %9, %cst_9 [0] : vector<512x128xf32> to vector<128xf32>
    %11 = vector.shape_cast %10 : vector<128xf32> to vector<1x128xf32>
    %c0_10 = arith.constant 0 : index
    %c0_11 = arith.constant 0 : index
    %c0_12 = arith.constant 0 : index
    %12 = vector.load %arg5[%c0_10, %c0_11, %c0_12] : memref<1x1x128xf32, #tpu.memory_space<vmem>>, vector<1x1x128xf32>
    %13 = vector.shape_cast %12 : vector<1x1x128xf32> to vector<1x128xf32>
    %14 = vector.shape_cast %11 : vector<1x128xf32> to vector<1x1x128xf32>
    tpu.vector_store %arg5[%c0_10, %c0_11, %c0_12], %14 {strides = array<i32>} : memref<1x1x128xf32, #tpu.memory_space<vmem>>, vector<1x1x128xf32>,
    return
  }
  func.func @transform_0(%arg0: i32) -> (i32, i32) {
    %c0_i32 = arith.constant 0 : i32
    %c0_i32_0 = arith.constant 0 : i32
    return %arg0, %c0_i32 : i32, i32
  }
  func.func @transform_1(%arg0: i32) -> (i32, i32) {
    %c0_i32 = arith.constant 0 : i32
    %c0_i32_0 = arith.constant 0 : i32
    %c0_i32_1 = arith.constant 0 : i32
    return %c0_i32, %c0_i32_0 : i32, i32
  }
  func.func @transform_2(%arg0: i32) -> (i32, i32) {
    %c0_i32 = arith.constant 0 : i32
    %c0_i32_0 = arith.constant 0 : i32
    return %arg0, %c0_i32 : i32, i32
  }
  func.func @transform_3(%arg0: i32) -> (i32, i32, i32) {
    %c0_i32 = arith.constant 0 : i32
    %c0_i32_0 = arith.constant 0 : i32
    %c0_i32_1 = arith.constant 0 : i32
    return %arg0, %c0_i32, %c0_i32_0 : i32, i32, i32
  }
  func.func @transform_4(%arg0: i32) -> (i32, i32, i32) {
    %c0_i32 = arith.constant 0 : i32
    %c0_i32_0 = arith.constant 0 : i32
    %c0_i32_1 = arith.constant 0 : i32
    return %arg0, %c0_i32, %c0_i32_0 : i32, i32, i32
  }
}

module attributes {stable_mosaic.version = 11 : i64} {
  func.func @_bn_relu_kernel(%arg0: i32, %arg1: memref<512x128xf32, #tpu.memory_space<vmem>>, %arg2: memref<1x128xf32, #tpu.memory_space<vmem>>, %arg3: memref<1x128xf32, #tpu.memory_space<vmem>>, %arg4: memref<512x128xbf16, #tpu.memory_space<vmem>>) attributes {dimension_semantics = [#tpu.dimension_semantics<parallel>], iteration_bounds = array<i64: 1>, scalar_prefetch = 0 : i64, scratch_operands = 0 : i64, tpu.core_type = #tpu.core_type<tc>, window_params = [{transform_indices = @transform_0, window_bounds = array<i64: 512, 128>}, {pipeline_mode = #tpu.pipeline_mode<synchronous>, transform_indices = @transform_1, window_bounds = array<i64: 1, 128>}, {pipeline_mode = #tpu.pipeline_mode<synchronous>, transform_indices = @transform_2, window_bounds = array<i64: 1, 128>}, {transform_indices = @transform_3, window_bounds = array<i64: 512, 128>}]} {
    %c0 = arith.constant 0 : index
    %c0_0 = arith.constant 0 : index
    %0 = vector.load %arg1[%c0, %c0_0] : memref<512x128xf32, #tpu.memory_space<vmem>>, vector<512x128xf32>
    %c0_1 = arith.constant 0 : index
    %c0_2 = arith.constant 0 : index
    %1 = vector.load %arg2[%c0_1, %c0_2] : memref<1x128xf32, #tpu.memory_space<vmem>>, vector<1x128xf32>
    %2 = vector.broadcast %1 : vector<1x128xf32> to vector<512x128xf32>
    %3 = arith.mulf %0, %2 : vector<512x128xf32>
    %c0_3 = arith.constant 0 : index
    %c0_4 = arith.constant 0 : index
    %4 = vector.load %arg3[%c0_3, %c0_4] : memref<1x128xf32, #tpu.memory_space<vmem>>, vector<1x128xf32>
    %5 = vector.broadcast %4 : vector<1x128xf32> to vector<512x128xf32>
    %6 = arith.addf %3, %5 : vector<512x128xf32>
    %cst = arith.constant 0.000000e+00 : f32
    %7 = vector.broadcast %cst : f32 to vector<512x128xf32>
    %8 = arith.maximumf %6, %7 : vector<512x128xf32>
    %9 = arith.truncf %8 : vector<512x128xf32> to vector<512x128xbf16>
    %c0_5 = arith.constant 0 : index
    %c0_6 = arith.constant 0 : index
    %10 = vector.load %arg4[%c0_5, %c0_6] : memref<512x128xbf16, #tpu.memory_space<vmem>>, vector<512x128xbf16>
    tpu.vector_store %arg4[%c0_5, %c0_6], %9 {strides = array<i32>} : memref<512x128xbf16, #tpu.memory_space<vmem>>, vector<512x128xbf16>,
    return
  }
  func.func @transform_0(%arg0: i32) -> (i32, i32) {
    %c0_i32 = arith.constant 0 : i32
    %c0_i32_0 = arith.constant 0 : i32
    return %arg0, %c0_i32 : i32, i32
  }
  func.func @transform_1(%arg0: i32) -> (i32, i32) {
    %c0_i32 = arith.constant 0 : i32
    %c0_i32_0 = arith.constant 0 : i32
    %c0_i32_1 = arith.constant 0 : i32
    return %c0_i32, %c0_i32_0 : i32, i32
  }
  func.func @transform_2(%arg0: i32) -> (i32, i32) {
    %c0_i32 = arith.constant 0 : i32
    %c0_i32_0 = arith.constant 0 : i32
    %c0_i32_1 = arith.constant 0 : i32
    return %c0_i32, %c0_i32_0 : i32, i32
  }
  func.func @transform_3(%arg0: i32) -> (i32, i32) {
    %c0_i32 = arith.constant 0 : i32
    %c0_i32_0 = arith.constant 0 : i32
    return %arg0, %c0_i32 : i32, i32
  }
}

module attributes {stable_mosaic.version = 11 : i64} {
  func.func @_bn_relu_kernel(%arg0: i32, %arg1: memref<512x128xf32, #tpu.memory_space<vmem>>, %arg2: memref<1x128xf32, #tpu.memory_space<vmem>>, %arg3: memref<1x128xf32, #tpu.memory_space<vmem>>, %arg4: memref<512x128xf32, #tpu.memory_space<vmem>>) attributes {dimension_semantics = [#tpu.dimension_semantics<parallel>], iteration_bounds = array<i64: 1>, scalar_prefetch = 0 : i64, scratch_operands = 0 : i64, tpu.core_type = #tpu.core_type<tc>, window_params = [{transform_indices = @transform_0, window_bounds = array<i64: 512, 128>}, {pipeline_mode = #tpu.pipeline_mode<synchronous>, transform_indices = @transform_1, window_bounds = array<i64: 1, 128>}, {pipeline_mode = #tpu.pipeline_mode<synchronous>, transform_indices = @transform_2, window_bounds = array<i64: 1, 128>}, {transform_indices = @transform_3, window_bounds = array<i64: 512, 128>}]} {
    %c0 = arith.constant 0 : index
    %c0_0 = arith.constant 0 : index
    %0 = vector.load %arg1[%c0, %c0_0] : memref<512x128xf32, #tpu.memory_space<vmem>>, vector<512x128xf32>
    %c0_1 = arith.constant 0 : index
    %c0_2 = arith.constant 0 : index
    %1 = vector.load %arg2[%c0_1, %c0_2] : memref<1x128xf32, #tpu.memory_space<vmem>>, vector<1x128xf32>
    %2 = vector.broadcast %1 : vector<1x128xf32> to vector<512x128xf32>
    %3 = arith.mulf %0, %2 : vector<512x128xf32>
    %c0_3 = arith.constant 0 : index
    %c0_4 = arith.constant 0 : index
    %4 = vector.load %arg3[%c0_3, %c0_4] : memref<1x128xf32, #tpu.memory_space<vmem>>, vector<1x128xf32>
    %5 = vector.broadcast %4 : vector<1x128xf32> to vector<512x128xf32>
    %6 = arith.addf %3, %5 : vector<512x128xf32>
    %cst = arith.constant 0.000000e+00 : f32
    %7 = vector.broadcast %cst : f32 to vector<512x128xf32>
    %8 = arith.maximumf %6, %7 : vector<512x128xf32>
    %c0_5 = arith.constant 0 : index
    %c0_6 = arith.constant 0 : index
    %9 = vector.load %arg4[%c0_5, %c0_6] : memref<512x128xf32, #tpu.memory_space<vmem>>, vector<512x128xf32>
    tpu.vector_store %arg4[%c0_5, %c0_6], %8 {strides = array<i32>} : memref<512x128xf32, #tpu.memory_space<vmem>>, vector<512x128xf32>,
    return
  }
  func.func @transform_0(%arg0: i32) -> (i32, i32) {
    %c0_i32 = arith.constant 0 : i32
    %c0_i32_0 = arith.constant 0 : i32
    return %arg0, %c0_i32 : i32, i32
  }
  func.func @transform_1(%arg0: i32) -> (i32, i32) {
    %c0_i32 = arith.constant 0 : i32
    %c0_i32_0 = arith.constant 0 : i32
    %c0_i32_1 = arith.constant 0 : i32
    return %c0_i32, %c0_i32_0 : i32, i32
  }
  func.func @transform_2(%arg0: i32) -> (i32, i32) {
    %c0_i32 = arith.constant 0 : i32
    %c0_i32_0 = arith.constant 0 : i32
    %c0_i32_1 = arith.constant 0 : i32
    return %c0_i32, %c0_i32_0 : i32, i32
  }
  func.func @transform_3(%arg0: i32) -> (i32, i32) {
    %c0_i32 = arith.constant 0 : i32
    %c0_i32_0 = arith.constant 0 : i32
    return %arg0, %c0_i32 : i32, i32
  }
}

</mosaic_0001>

<bundles_post_ra>
// kernel: double_conv.5
= control target key start
LH: loop header
LB: loop body
LE: loop exit
PB: predicated region body
PF: predicated region fallthrough
CT: control target
= control target key end

     0   :  { %s1375_s0 = inlined_call_operand.vmem [shape: f32[512,128], index: 0, kind: input, shape index: {}]   ;;  %s1376_s1 = inlined_call_operand.vmem [shape: f32[1,128], index: 1, kind: input, shape index: {}]   ;;  %s1377_s2 = inlined_call_operand.vmem [shape: f32[1,128], index: 2, kind: input, shape index: {}]   ;;  %s1378_s3 = inlined_call_operand.vmem [shape: bf16[512,128], index: 3, kind: output, shape index: {}]  }
   0x1   :  { %v14_v0 = vld [vmem:[%s1375_s0] sm:$0xff]  ;;  %v15_v1 = vld [vmem:[%s1375_s0 + $0x8] sm:$0xff]  ;;  %v16_v6 = vld [vmem:[%s1375_s0 + $0x10] sm:$0xff] }
   0x2   :  { %v958_v2 = vld [vmem:[%s1376_s1] ss:$0 sm:$0xff]  ;;  %v17_v7 = vld [vmem:[%s1375_s0 + $0x18] sm:$0xff]  ;;  %v19_v11 = vld [vmem:[%s1375_s0 + $0x28] sm:$0xff] }
   0x3   :  { %v85_v3 = vmul.f32 %v958_v2, %v14_v0  ;;  %v86_v4 = vmul.f32 %v958_v2, %v15_v1  ;;  %v965_v5 = vld [vmem:[%s1377_s2] ss:$0 sm:$0xff]  ;;  %v87_v8 = vmul.f32 %v958_v2, %v16_v6  ;;  %v88_v9 = vmul.f32 %v958_v2, %v17_v7  ;;  %v20_v12 = vld [vmem:[%s1375_s0 + $0x30] sm:$0xff]  ;;  %v21_v17 = vld [vmem:[%s1375_s0 + $0x38] sm:$0xff] }
   0x4   :  { %v18_v10 = vld [vmem:[%s1375_s0 + $0x20] sm:$0xff]  ;;  %v90_v16 = vmul.f32 %v958_v2, %v19_v11  ;;  %v91_v20 = vmul.f32 %v958_v2, %v20_v12  ;;  %v92_v21 = vmul.f32 %v958_v2, %v21_v17  ;;  %v23_v27 = vld [vmem:[%s1375_s0 + $0x48] sm:$0xff]  ;;  %v24_v32 = vld [vmem:[%s1375_s0 + $0x50] sm:$0xff] }
   0x5   :  { %v156_v13 = vadd.f32 %v965_v5, %v85_v3  ;;  %v157_v14 = vadd.f32 %v965_v5, %v86_v4  ;;  %v89_v15 = vmul.f32 %v958_v2, %v18_v10  ;;  %v158_v18 = vadd.f32 %v965_v5, %v87_v8  ;;  %v22_v22 = vld [vmem:[%s1375_s0 + $0x40] sm:$0xff]  ;;  %v25_v33 = vld [vmem:[%s1375_s0 + $0x58] sm:$0xff]  ;;  %v27_v39 = vld [vmem:[%s1375_s0 + $0x68] sm:$0xff] }
   0x6   :  { %v159_v19 = vadd.f32 %v965_v5, %v88_v9  ;;  %v161_v26 = vadd.f32 %v965_v5, %v90_v16  ;;  %v162_v30 = vadd.f32 %v965_v5, %v91_v20  ;;  %v163_v31 = vadd.f32 %v965_v5, %v92_v21  ;;  %v26_v38 = vld [vmem:[%s1375_s0 + $0x60] sm:$0xff]  ;;  %v28_v44 = vld [vmem:[%s1375_s0 + $0x70] sm:$0xff]  ;;  %v29_v49 = vld [vmem:[%s1375_s0 + $0x78] sm:$0xff] }
   0x7   :  { %v220_v23 = vmax.f32 %v156_v13, 0.0  ;;  %v221_v24 = vmax.f32 %v157_v14, 0.0  ;;  %v160_v25 = vadd.f32 %v965_v5, %v89_v15  ;;  %v222_v28 = vmax.f32 %v158_v18, 0.0  ;;  %v30_v54 = vld [vmem:[%s1375_s0 + $0x80] sm:$0xff]  ;;  %v31_v63 = vld [vmem:[%s1375_s0 + $0x88] sm:$0xff]  ;;  %v32_v6 = vld [vmem:[%s1375_s0 + $0x90] sm:$0xff] }
   0x8   :  { %v223_v29 = vmax.f32 %v159_v19, 0.0  ;;  %v225_v36 = vmax.f32 %v161_v26, 0.0  ;;  %v93_v37 = vmul.f32 %v958_v2, %v22_v22  ;;  %v226_v41 = vmax.f32 %v162_v30, 0.0  ;;  %v33_v7 = vld [vmem:[%s1375_s0 + $0x98] sm:$0xff]  ;;  %v34_v12 = vld [vmem:[%s1375_s0 + $0xa0] sm:$0xff]  ;;  %v35_v13 = vld [vmem:[%s1375_s0 + $0xa8] sm:$0xff] }
   0x9   :  { %v741_v34 = vpack.c.bf16 %v221_v24, %v220_v23  ;;  %v224_v35 = vmax.f32 %v160_v25, 0.0  ;;  %v227_v42 = vmax.f32 %v163_v31, 0.0  ;;  %v94_v43 = vmul.f32 %v958_v2, %v23_v27  ;;  %v36_v18 = vld [vmem:[%s1375_s0 + $0xb0] sm:$0xff]  ;;  %v37_v23 = vld [vmem:[%s1375_s0 + $0xb8] sm:$0xff] }
   0xa   :  { %v746_v40 = vpack.c.bf16 %v223_v29, %v222_v28  ;;  %v164_v46 = vadd.f32 %v965_v5, %v93_v37  ;;  %v95_v47 = vmul.f32 %v958_v2, %v24_v32  ;;  %v96_v48 = vmul.f32 %v958_v2, %v25_v33  ;;  %v38_v28 = vld [vmem:[%s1375_s0 + $0xc0] sm:$0xff]  ;;  %v39_v37 = vld [vmem:[%s1375_s0 + $0xc8] sm:$0xff] }
   0xb   :  { %742 = vst [vmem:[%s1378_s3] sm:$0xff] %v741_v34   ;;  %v751_v45 = vpack.c.bf16 %v225_v36, %v224_v35  ;;  %v756_v50 = vpack.c.bf16 %v227_v42, %v226_v41  ;;  %v165_v51 = vadd.f32 %v965_v5, %v94_v43  ;;  %v97_v52 = vmul.f32 %v958_v2, %v26_v38  ;;  %v40_v42 = vld [vmem:[%s1375_s0 + $0xd0] sm:$0xff]  ;;  %v41_v43 = vld [vmem:[%s1375_s0 + $0xd8] sm:$0xff] }
   0xc   :  { %898 = vst [vmem:[%s1378_s3 + $0x8] sm:$0xff] %v746_v40   ;;  %v98_v53 = vmul.f32 %v958_v2, %v27_v39  ;;  %v228_v55 = vmax.f32 %v164_v46, 0.0  ;;  %v166_v56 = vadd.f32 %v965_v5, %v95_v47  ;;  %v167_v57 = vadd.f32 %v965_v5, %v96_v48  ;;  %v42_v48 = vld [vmem:[%s1375_s0 + $0xe0] sm:$0xff] }
   0xd   :  { %899 = vst [vmem:[%s1378_s3 + $0x10] sm:$0xff] %v751_v45   ;;  %v99_v58 = vmul.f32 %v958_v2, %v28_v44  ;;  %900 = vst [vmem:[%s1378_s3 + $0x18] sm:$0xff] %v756_v50   ;;  %v229_v59 = vmax.f32 %v165_v51, 0.0  ;;  %v168_v60 = vadd.f32 %v965_v5, %v97_v52  ;;  %v100_v62 = vmul.f32 %v958_v2, %v29_v49  ;;  %v43_v49 = vld [vmem:[%s1375_s0 + $0xe8] sm:$0xff] }
   0xe   :  { %v169_v61 = vadd.f32 %v965_v5, %v98_v53  ;;  %v230_v0 = vmax.f32 %v166_v56, 0.0  ;;  %v231_v1 = vmax.f32 %v167_v57, 0.0  ;;  %v101_v4 = vmul.f32 %v958_v2, %v30_v54  ;;  %v44_v54 = vld [vmem:[%s1375_s0 + $0xf0] sm:$0xff] }
   0xf   :  { %v170_v3 = vadd.f32 %v965_v5, %v99_v58  ;;  %v761_v8 = vpack.c.bf16 %v229_v59, %v228_v55  ;;  %v232_v9 = vmax.f32 %v168_v60, 0.0  ;;  %v171_v11 = vadd.f32 %v965_v5, %v100_v62  ;;  %v45_v59 = vld [vmem:[%s1375_s0 + $0xf8] sm:$0xff] }
  0x10   :  { %v233_v10 = vmax.f32 %v169_v61, 0.0  ;;  %v766_v14 = vpack.c.bf16 %v231_v1, %v230_v0  ;;  %v102_v16 = vmul.f32 %v958_v2, %v31_v63  ;;  %v172_v17 = vadd.f32 %v965_v5, %v101_v4  ;;  %v46_v0 = vld [vmem:[%s1375_s0 + $0x100] sm:$0xff] }
  0x11   :  { %v234_v15 = vmax.f32 %v170_v3, 0.0  ;;  %901 = vst [vmem:[%s1378_s3 + $0x20] sm:$0xff] %v761_v8   ;;  %v235_v20 = vmax.f32 %v171_v11, 0.0  ;;  %v103_v21 = vmul.f32 %v958_v2, %v32_v6  ;;  %v104_v22 = vmul.f32 %v958_v2, %v33_v7  ;;  %v47_v11 = vld [vmem:[%s1375_s0 + $0x108] sm:$0xff] }
  0x12   :  { %v771_v19 = vpack.c.bf16 %v233_v10, %v232_v9  ;;  %902 = vst [vmem:[%s1378_s3 + $0x28] sm:$0xff] %v766_v14   ;;  %v173_v24 = vadd.f32 %v965_v5, %v102_v16  ;;  %v236_v25 = vmax.f32 %v172_v17, 0.0  ;;  %v105_v26 = vmul.f32 %v958_v2, %v34_v12  ;;  %v48_v16 = vld [vmem:[%s1375_s0 + $0x110] sm:$0xff]  ;;  %v49_v17 = vld [vmem:[%s1375_s0 + $0x118] sm:$0xff] }
  0x13   :  { %v106_v27 = vmul.f32 %v958_v2, %v35_v13  ;;  %v776_v29 = vpack.c.bf16 %v235_v20, %v234_v15  ;;  %v174_v30 = vadd.f32 %v965_v5, %v103_v21  ;;  %v175_v31 = vadd.f32 %v965_v5, %v104_v22  ;;  %v50_v22 = vld [vmem:[%s1375_s0 + $0x120] sm:$0xff] }
  0x14   :  { %903 = vst [vmem:[%s1378_s3 + $0x30] sm:$0xff] %v771_v19   ;;  %v107_v32 = vmul.f32 %v958_v2, %v36_v18  ;;  %v237_v33 = vmax.f32 %v173_v24, 0.0  ;;  %v176_v34 = vadd.f32 %v965_v5, %v105_v26  ;;  %v108_v36 = vmul.f32 %v958_v2, %v37_v23  ;;  %v51_v23 = vld [vmem:[%s1375_s0 + $0x128] sm:$0xff] }
  0x15   :  { %v177_v35 = vadd.f32 %v965_v5, %v106_v27  ;;  %904 = vst [vmem:[%s1378_s3 + $0x38] sm:$0xff] %v776_v29   ;;  %v238_v38 = vmax.f32 %v174_v30, 0.0  ;;  %v239_v39 = vmax.f32 %v175_v31, 0.0  ;;  %v109_v41 = vmul.f32 %v958_v2, %v38_v28  ;;  %v52_v28 = vld [vmem:[%s1375_s0 + $0x130] sm:$0xff] }
  0x16   :  { %v178_v40 = vadd.f32 %v965_v5, %v107_v32  ;;  %v781_v44 = vpack.c.bf16 %v237_v33, %v236_v25  ;;  %v240_v45 = vmax.f32 %v176_v34, 0.0  ;;  %v179_v47 = vadd.f32 %v965_v5, %v108_v36  ;;  %v53_v33 = vld [vmem:[%s1375_s0 + $0x138] sm:$0xff] }
  0x17   :  { %v241_v46 = vmax.f32 %v177_v35, 0.0  ;;  %v786_v50 = vpack.c.bf16 %v239_v39, %v238_v38  ;;  %v110_v52 = vmul.f32 %v958_v2, %v39_v37  ;;  %v180_v53 = vadd.f32 %v965_v5, %v109_v41  ;;  %v54_v38 = vld [vmem:[%s1375_s0 + $0x140] sm:$0xff] }
  0x18   :  { %v242_v51 = vmax.f32 %v178_v40, 0.0  ;;  %905 = vst [vmem:[%s1378_s3 + $0x40] sm:$0xff] %v781_v44   ;;  %v243_v56 = vmax.f32 %v179_v47, 0.0  ;;  %v111_v57 = vmul.f32 %v958_v2, %v40_v42  ;;  %v112_v58 = vmul.f32 %v958_v2, %v41_v43  ;;  %v55_v47 = vld [vmem:[%s1375_s0 + $0x148] sm:$0xff] }
  0x19   :  { %v791_v55 = vpack.c.bf16 %v241_v46, %v240_v45  ;;  %906 = vst [vmem:[%s1378_s3 + $0x48] sm:$0xff] %v786_v50   ;;  %v181_v60 = vadd.f32 %v965_v5, %v110_v52  ;;  %v244_v61 = vmax.f32 %v180_v53, 0.0  ;;  %v113_v62 = vmul.f32 %v958_v2, %v42_v48  ;;  %v56_v52 = vld [vmem:[%s1375_s0 + $0x150] sm:$0xff]  ;;  %v57_v53 = vld [vmem:[%s1375_s0 + $0x158] sm:$0xff] }
  0x1a   :  { %v114_v63 = vmul.f32 %v958_v2, %v43_v49  ;;  %v796_v1 = vpack.c.bf16 %v243_v56, %v242_v51  ;;  %v182_v3 = vadd.f32 %v965_v5, %v111_v57  ;;  %v183_v4 = vadd.f32 %v965_v5, %v112_v58  ;;  %v58_v58 = vld [vmem:[%s1375_s0 + $0x160] sm:$0xff] }
  0x1b   :  { %907 = vst [vmem:[%s1378_s3 + $0x50] sm:$0xff] %v791_v55   ;;  %v115_v6 = vmul.f32 %v958_v2, %v44_v54  ;;  %v245_v7 = vmax.f32 %v181_v60, 0.0  ;;  %v184_v8 = vadd.f32 %v965_v5, %v113_v62  ;;  %v116_v10 = vmul.f32 %v958_v2, %v45_v59  ;;  %v59_v59 = vld [vmem:[%s1375_s0 + $0x168] sm:$0xff] }
  0x1c   :  { %v185_v9 = vadd.f32 %v965_v5, %v114_v63  ;;  %908 = vst [vmem:[%s1378_s3 + $0x58] sm:$0xff] %v796_v1   ;;  %v246_v12 = vmax.f32 %v182_v3, 0.0  ;;  %v247_v13 = vmax.f32 %v183_v4, 0.0  ;;  %v117_v15 = vmul.f32 %v958_v2, %v46_v0  ;;  %v60_v0 = vld [vmem:[%s1375_s0 + $0x170] sm:$0xff] }
  0x1d   :  { %v186_v14 = vadd.f32 %v965_v5, %v115_v6  ;;  %v801_v18 = vpack.c.bf16 %v245_v7, %v244_v61  ;;  %v248_v19 = vmax.f32 %v184_v8, 0.0  ;;  %v187_v21 = vadd.f32 %v965_v5, %v116_v10  ;;  %v61_v7 = vld [vmem:[%s1375_s0 + $0x178] sm:$0xff] }
  0x1e   :  { %v249_v20 = vmax.f32 %v185_v9, 0.0  ;;  %v806_v24 = vpack.c.bf16 %v247_v13, %v246_v12  ;;  %v118_v26 = vmul.f32 %v958_v2, %v47_v11  ;;  %v188_v27 = vadd.f32 %v965_v5, %v117_v15  ;;  %v62_v12 = vld [vmem:[%s1375_s0 + $0x180] sm:$0xff] }
  0x1f   :  { %v250_v25 = vmax.f32 %v186_v14, 0.0  ;;  %909 = vst [vmem:[%s1378_s3 + $0x60] sm:$0xff] %v801_v18   ;;  %v251_v30 = vmax.f32 %v187_v21, 0.0  ;;  %v119_v31 = vmul.f32 %v958_v2, %v48_v16  ;;  %v120_v32 = vmul.f32 %v958_v2, %v49_v17  ;;  %v63_v21 = vld [vmem:[%s1375_s0 + $0x188] sm:$0xff] }
  0x20   :  { %v811_v29 = vpack.c.bf16 %v249_v20, %v248_v19  ;;  %910 = vst [vmem:[%s1378_s3 + $0x68] sm:$0xff] %v806_v24   ;;  %v189_v34 = vadd.f32 %v965_v5, %v118_v26  ;;  %v252_v35 = vmax.f32 %v188_v27, 0.0  ;;  %v121_v36 = vmul.f32 %v958_v2, %v50_v22  ;;  %v64_v26 = vld [vmem:[%s1375_s0 + $0x190] sm:$0xff]  ;;  %v65_v27 = vld [vmem:[%s1375_s0 + $0x198] sm:$0xff] }
  0x21   :  { %v122_v37 = vmul.f32 %v958_v2, %v51_v23  ;;  %v816_v39 = vpack.c.bf16 %v251_v30, %v250_v25  ;;  %v190_v40 = vadd.f32 %v965_v5, %v119_v31  ;;  %v191_v41 = vadd.f32 %v965_v5, %v120_v32  ;;  %v66_v32 = vld [vmem:[%s1375_s0 + $0x1a0] sm:$0xff] }
  0x22   :  { %911 = vst [vmem:[%s1378_s3 + $0x70] sm:$0xff] %v811_v29   ;;  %v123_v42 = vmul.f32 %v958_v2, %v52_v28  ;;  %v253_v43 = vmax.f32 %v189_v34, 0.0  ;;  %v192_v44 = vadd.f32 %v965_v5, %v121_v36  ;;  %v124_v46 = vmul.f32 %v958_v2, %v53_v33  ;;  %v67_v33 = vld [vmem:[%s1375_s0 + $0x1a8] sm:$0xff] }
  0x23   :  { %v193_v45 = vadd.f32 %v965_v5, %v122_v37  ;;  %912 = vst [vmem:[%s1378_s3 + $0x78] sm:$0xff] %v816_v39   ;;  %v254_v48 = vmax.f32 %v190_v40, 0.0  ;;  %v255_v49 = vmax.f32 %v191_v41, 0.0  ;;  %v125_v51 = vmul.f32 %v958_v2, %v54_v38  ;;  %v68_v38 = vld [vmem:[%s1375_s0 + $0x1b0] sm:$0xff] }
  0x24   :  { %v194_v50 = vadd.f32 %v965_v5, %v123_v42  ;;  %v821_v54 = vpack.c.bf16 %v253_v43, %v252_v35  ;;  %v256_v55 = vmax.f32 %v192_v44, 0.0  ;;  %v195_v57 = vadd.f32 %v965_v5, %v124_v46  ;;  %v69_v43 = vld [vmem:[%s1375_s0 + $0x1b8] sm:$0xff] }
  0x25   :  { %v257_v56 = vmax.f32 %v193_v45, 0.0  ;;  %v826_v60 = vpack.c.bf16 %v255_v49, %v254_v48  ;;  %v126_v62 = vmul.f32 %v958_v2, %v55_v47  ;;  %v196_v63 = vadd.f32 %v965_v5, %v125_v51  ;;  %v70_v48 = vld [vmem:[%s1375_s0 + $0x1c0] sm:$0xff] }
  0x26   :  { %v258_v61 = vmax.f32 %v194_v50, 0.0  ;;  %913 = vst [vmem:[%s1378_s3 + $0x80] sm:$0xff] %v821_v54   ;;  %v259_v3 = vmax.f32 %v195_v57, 0.0  ;;  %v127_v4 = vmul.f32 %v958_v2, %v56_v52  ;;  %v128_v6 = vmul.f32 %v958_v2, %v57_v53  ;;  %v71_v57 = vld [vmem:[%s1375_s0 + $0x1c8] sm:$0xff] }
  0x27   :  { %v831_v1 = vpack.c.bf16 %v257_v56, %v256_v55  ;;  %914 = vst [vmem:[%s1378_s3 + $0x88] sm:$0xff] %v826_v60   ;;  %v197_v8 = vadd.f32 %v965_v5, %v126_v62  ;;  %v260_v9 = vmax.f32 %v196_v63, 0.0  ;;  %v129_v10 = vmul.f32 %v958_v2, %v58_v58  ;;  %v72_v62 = vld [vmem:[%s1375_s0 + $0x1d0] sm:$0xff]  ;;  %v73_v63 = vld [vmem:[%s1375_s0 + $0x1d8] sm:$0xff] }
  0x28   :  { %v130_v11 = vmul.f32 %v958_v2, %v59_v59  ;;  %v836_v13 = vpack.c.bf16 %v259_v3, %v258_v61  ;;  %v198_v14 = vadd.f32 %v965_v5, %v127_v4  ;;  %v199_v15 = vadd.f32 %v965_v5, %v128_v6  ;;  %v74_v6 = vld [vmem:[%s1375_s0 + $0x1e0] sm:$0xff] }
  0x29   :  { %915 = vst [vmem:[%s1378_s3 + $0x90] sm:$0xff] %v831_v1   ;;  %v131_v16 = vmul.f32 %v958_v2, %v60_v0  ;;  %v261_v17 = vmax.f32 %v197_v8, 0.0  ;;  %v200_v18 = vadd.f32 %v965_v5, %v129_v10  ;;  %v132_v20 = vmul.f32 %v958_v2, %v61_v7  ;;  %v75_v7 = vld [vmem:[%s1375_s0 + $0x1e8] sm:$0xff] }
  0x2a   :  { %v201_v19 = vadd.f32 %v965_v5, %v130_v11  ;;  %916 = vst [vmem:[%s1378_s3 + $0x98] sm:$0xff] %v836_v13   ;;  %v262_v22 = vmax.f32 %v198_v14, 0.0  ;;  %v263_v23 = vmax.f32 %v199_v15, 0.0  ;;  %v133_v25 = vmul.f32 %v958_v2, %v62_v12  ;;  %v76_v12 = vld [vmem:[%s1375_s0 + $0x1f0] sm:$0xff] }
  0x2b   :  { %v202_v24 = vadd.f32 %v965_v5, %v131_v16  ;;  %v841_v28 = vpack.c.bf16 %v261_v17, %v260_v9  ;;  %v264_v29 = vmax.f32 %v200_v18, 0.0  ;;  %v203_v31 = vadd.f32 %v965_v5, %v132_v20  ;;  %v77_v17 = vld [vmem:[%s1375_s0 + $0x1f8] sm:$0xff] }
  0x2c   :  { %v265_v30 = vmax.f32 %v201_v19, 0.0  ;;  %v846_v34 = vpack.c.bf16 %v263_v23, %v262_v22  ;;  %v134_v36 = vmul.f32 %v958_v2, %v63_v21  ;;  %v204_v37 = vadd.f32 %v965_v5, %v133_v25 }
  0x2d   :  { %v266_v35 = vmax.f32 %v202_v24, 0.0  ;;  %917 = vst [vmem:[%s1378_s3 + $0xa0] sm:$0xff] %v841_v28   ;;  %v267_v40 = vmax.f32 %v203_v31, 0.0  ;;  %v135_v41 = vmul.f32 %v958_v2, %v64_v26  ;;  %v136_v42 = vmul.f32 %v958_v2, %v65_v27 }
  0x2e   :  { %v851_v39 = vpack.c.bf16 %v265_v30, %v264_v29  ;;  %918 = vst [vmem:[%s1378_s3 + $0xa8] sm:$0xff] %v846_v34   ;;  %v205_v44 = vadd.f32 %v965_v5, %v134_v36  ;;  %v268_v45 = vmax.f32 %v204_v37, 0.0  ;;  %v137_v46 = vmul.f32 %v958_v2, %v66_v32 }
  0x2f   :  { %v138_v47 = vmul.f32 %v958_v2, %v67_v33  ;;  %v856_v49 = vpack.c.bf16 %v267_v40, %v266_v35  ;;  %v206_v50 = vadd.f32 %v965_v5, %v135_v41  ;;  %v207_v51 = vadd.f32 %v965_v5, %v136_v42 }
  0x30   :  { %919 = vst [vmem:[%s1378_s3 + $0xb0] sm:$0xff] %v851_v39   ;;  %v139_v52 = vmul.f32 %v958_v2, %v68_v38  ;;  %v269_v53 = vmax.f32 %v205_v44, 0.0  ;;  %v208_v54 = vadd.f32 %v965_v5, %v137_v46  ;;  %v140_v56 = vmul.f32 %v958_v2, %v69_v43 }
  0x31   :  { %v209_v55 = vadd.f32 %v965_v5, %v138_v47  ;;  %920 = vst [vmem:[%s1378_s3 + $0xb8] sm:$0xff] %v856_v49   ;;  %v270_v58 = vmax.f32 %v206_v50, 0.0  ;;  %v271_v59 = vmax.f32 %v207_v51, 0.0  ;;  %v141_v61 = vmul.f32 %v958_v2, %v70_v48 }
  0x32   :  { %v210_v60 = vadd.f32 %v965_v5, %v139_v52  ;;  %v861_v0 = vpack.c.bf16 %v269_v53, %v268_v45  ;;  %v272_v1 = vmax.f32 %v208_v54, 0.0  ;;  %v211_v4 = vadd.f32 %v965_v5, %v140_v56 }
  0x33   :  { %v273_v3 = vmax.f32 %v209_v55, 0.0  ;;  %v866_v8 = vpack.c.bf16 %v271_v59, %v270_v58  ;;  %v142_v10 = vmul.f32 %v958_v2, %v71_v57  ;;  %v212_v11 = vadd.f32 %v965_v5, %v141_v61 }
  0x34   :  { %v274_v9 = vmax.f32 %v210_v60, 0.0  ;;  %921 = vst [vmem:[%s1378_s3 + $0xc0] sm:$0xff] %v861_v0   ;;  %v275_v14 = vmax.f32 %v211_v4, 0.0  ;;  %v143_v15 = vmul.f32 %v958_v2, %v72_v62  ;;  %v144_v16 = vmul.f32 %v958_v2, %v73_v63 }
  0x35   :  { %v871_v13 = vpack.c.bf16 %v273_v3, %v272_v1  ;;  %922 = vst [vmem:[%s1378_s3 + $0xc8] sm:$0xff] %v866_v8   ;;  %v213_v18 = vadd.f32 %v965_v5, %v142_v10  ;;  %v276_v19 = vmax.f32 %v212_v11, 0.0  ;;  %v145_v20 = vmul.f32 %v958_v2, %v74_v6 }
  0x36   :  { %v146_v21 = vmul.f32 %v958_v2, %v75_v7  ;;  %v876_v22 = vpack.c.bf16 %v275_v14, %v274_v9  ;;  %v214_v23 = vadd.f32 %v965_v5, %v143_v15  ;;  %v215_v24 = vadd.f32 %v965_v5, %v144_v16 }
  0x37   :  { %923 = vst [vmem:[%s1378_s3 + $0xd0] sm:$0xff] %v871_v13   ;;  %v147_v25 = vmul.f32 %v958_v2, %v76_v12  ;;  %v277_v26 = vmax.f32 %v213_v18, 0.0  ;;  %v216_v27 = vadd.f32 %v965_v5, %v145_v20  ;;  %v148_v29 = vmul.f32 %v958_v2, %v77_v17 }
  0x38   :  { %v217_v28 = vadd.f32 %v965_v5, %v146_v21  ;;  %924 = vst [vmem:[%s1378_s3 + $0xd8] sm:$0xff] %v876_v22   ;;  %v278_v30 = vmax.f32 %v214_v23, 0.0  ;;  %v279_v31 = vmax.f32 %v215_v24, 0.0 }
  0x39   :  { %v218_v32 = vadd.f32 %v965_v5, %v147_v25  ;;  %v881_v33 = vpack.c.bf16 %v277_v26, %v276_v19  ;;  %v280_v34 = vmax.f32 %v216_v27, 0.0  ;;  %v219_v36 = vadd.f32 %v965_v5, %v148_v29 }
  0x3a   :  { %v281_v35 = vmax.f32 %v217_v28, 0.0  ;;  %v886_v37 = vpack.c.bf16 %v279_v31, %v278_v30 }
  0x3b   :  { %v282_v38 = vmax.f32 %v218_v32, 0.0  ;;  %925 = vst [vmem:[%s1378_s3 + $0xe0] sm:$0xff] %v881_v33   ;;  %v283_v39 = vmax.f32 %v219_v36, 0.0 }
  0x3c   :  { %v891_v2 = vpack.c.bf16 %v281_v35, %v280_v34  ;;  %926 = vst [vmem:[%s1378_s3 + $0xe8] sm:$0xff] %v886_v37  }
  0x3d   :  { %v896_v40 = vpack.c.bf16 %v283_v39, %v282_v38 }
  0x3e   :  { %927 = vst [vmem:[%s1378_s3 + $0xf0] sm:$0xff] %v891_v2  }
  0x3f   :  { %928 = vst [vmem:[%s1378_s3 + $0xf8] sm:$0xff] %v896_v40  }

// kernel: double_conv.4
= control target key start
LH: loop header
LB: loop body
LE: loop exit
PB: predicated region body
PF: predicated region fallthrough
CT: control target
= control target key end

     0   :  { %s1655_s1 = inlined_call_operand.vmem [shape: bf16[128,128], index: 1, kind: input, shape index: {}]   ;;  %s1656_s0 = inlined_call_operand.vmem [shape: bf16[512,128], index: 0, kind: input, shape index: {}]   ;;  %s1657_s2 = inlined_call_operand.vmem [shape: f32[512,128], index: 2, kind: output, shape index: {0}]   ;;  %s1658_s3 = inlined_call_operand.vmem [shape: f32[1,1,128], index: 3, kind: output, shape index: {1}]   ;;  %s1659_s4 = inlined_call_operand.vmem [shape: f32[1,1,128], index: 4, kind: output, shape index: {2}]  }
   0x1   :  { %v1080_v0 = vld [vmem:[%s1655_s1] sm:$0xff]   ;;  %v1081_v1 = vld [vmem:[%s1655_s1 + $0x8] sm:$0xff]   ;;  %v1082_v2 = vld [vmem:[%s1655_s1 + $0x10] sm:$0xff]  }
   0x2   :  { %984 = vmatprep.subr.bf16.mxu0 %v1080_v0  ;;  %1064 = vmatprep.subr.bf16.mxu1 %v1080_v0  ;;  %v1083_v3 = vld [vmem:[%s1655_s1 + $0x18] sm:$0xff]   ;;  %v1088_v4 = vld [vmem:[%s1656_s0] sm:$0xff]   ;;  %v1085_v6 = vld [vmem:[%s1655_s1 + $0x28] sm:$0xff]  }
   0x3   :  { %985 = vmatpush3.bf16.msra.mxu0 %v1080_v0  ;;  %1072 = vmatpush3.bf16.msra.mxu1 %v1080_v0  ;;  %v1084_v5 = vld [vmem:[%s1655_s1 + $0x20] sm:$0xff]   ;;  %v1086_v7 = vld [vmem:[%s1655_s1 + $0x30] sm:$0xff]   ;;  %v1087_v8 = vld [vmem:[%s1655_s1 + $0x38] sm:$0xff]  }
   0x4   :  { %986 = vmatprep.subr.bf16.mxu0 %v1081_v1  ;;  %1065 = vmatprep.subr.bf16.mxu1 %v1081_v1  ;;  %v1104_v9 = vld [vmem:[%s1656_s0 + $0x80] sm:$0xff]   ;;  %v1089_v10 = vld [vmem:[%s1656_s0 + $0x8] sm:$0xff]   ;;  %v1090_v11 = vld [vmem:[%s1656_s0 + $0x10] sm:$0xff]  }
   0x5   :  { %1000 = vmatprep.mubr.bf16.mxu0 %v1088_v4  ;;  %1032 = vmatprep.mubr.bf16.mxu1 %v1104_v9  ;;  %v1105_v12 = vld [vmem:[%s1656_s0 + $0x88] sm:$0xff]   ;;  %v1106_v13 = vld [vmem:[%s1656_s0 + $0x90] sm:$0xff]   ;;  %v1091_v14 = vld [vmem:[%s1656_s0 + $0x18] sm:$0xff]  }
   0x6   :  { %v1092_v15 = vld [vmem:[%s1656_s0 + $0x20] sm:$0xff]   ;;  %v1107_v16 = vld [vmem:[%s1656_s0 + $0x98] sm:$0xff]   ;;  %v1093_v18 = vld [vmem:[%s1656_s0 + $0x28] sm:$0xff]  }
   0x7   :  { %987 = vmatpush3.bf16.msra.mxu0 %v1081_v1  ;;  %1073 = vmatpush3.bf16.msra.mxu1 %v1081_v1  ;;  %v1108_v17 = vld [vmem:[%s1656_s0 + $0xa0] sm:$0xff]   ;;  %v1109_v19 = vld [vmem:[%s1656_s0 + $0xa8] sm:$0xff]   ;;  %v1094_v20 = vld [vmem:[%s1656_s0 + $0x30] sm:$0xff]  }
   0x8   :  { %988 = vmatprep.subr.bf16.mxu0 %v1082_v2  ;;  %1066 = vmatprep.subr.bf16.mxu1 %v1082_v2  ;;  %v1110_v21 = vld [vmem:[%s1656_s0 + $0xb0] sm:$0xff]   ;;  %v1095_v22 = vld [vmem:[%s1656_s0 + $0x38] sm:$0xff]   ;;  %v1096_v24 = vld [vmem:[%s1656_s0 + $0x40] sm:$0xff]  }
   0x9   :  { %v1111_v23 = vld [vmem:[%s1656_s0 + $0xb8] sm:$0xff]   ;;  %v1112_v25 = vld [vmem:[%s1656_s0 + $0xc0] sm:$0xff]   ;;  %v1097_v26 = vld [vmem:[%s1656_s0 + $0x48] sm:$0xff]  }
   0xa   :  { %v1113_v27 = vld [vmem:[%s1656_s0 + $0xc8] sm:$0xff]   ;;  %v1098_v28 = vld [vmem:[%s1656_s0 + $0x50] sm:$0xff]   ;;  %v1099_v30 = vld [vmem:[%s1656_s0 + $0x58] sm:$0xff]  }
   0xb   :  { %989 = vmatpush3.bf16.msra.mxu0 %v1082_v2  ;;  %1074 = vmatpush3.bf16.msra.mxu1 %v1082_v2  ;;  %v1114_v29 = vld [vmem:[%s1656_s0 + $0xd0] sm:$0xff]   ;;  %v1115_v31 = vld [vmem:[%s1656_s0 + $0xd8] sm:$0xff]   ;;  %v1100_v32 = vld [vmem:[%s1656_s0 + $0x60] sm:$0xff]  }
   0xc   :  { %990 = vmatprep.subr.bf16.mxu0 %v1083_v3  ;;  %1067 = vmatprep.subr.bf16.mxu1 %v1083_v3  ;;  %v1116_v33 = vld [vmem:[%s1656_s0 + $0xe0] sm:$0xff]   ;;  %v1101_v34 = vld [vmem:[%s1656_s0 + $0x68] sm:$0xff]   ;;  %v1102_v36 = vld [vmem:[%s1656_s0 + $0x70] sm:$0xff]  }
   0xd   :  { %v1117_v35 = vld [vmem:[%s1656_s0 + $0xe8] sm:$0xff]   ;;  %v1118_v37 = vld [vmem:[%s1656_s0 + $0xf0] sm:$0xff]   ;;  %v1103_v38 = vld [vmem:[%s1656_s0 + $0x78] sm:$0xff]  }
   0xe   :  { %v1119_v39 = vld [vmem:[%s1656_s0 + $0xf8] sm:$0xff]  }
   0xf   :  { %991 = vmatpush3.bf16.msra.mxu0 %v1083_v3  ;;  %1075 = vmatpush3.bf16.msra.mxu1 %v1083_v3 }
  0x10   :  { %992 = vmatprep.subr.bf16.mxu0 %v1084_v5  ;;  %1068 = vmatprep.subr.bf16.mxu1 %v1084_v5 }
  0x13   :  { %993 = vmatpush3.bf16.msra.mxu0 %v1084_v5  ;;  %1076 = vmatpush3.bf16.msra.mxu1 %v1084_v5 }
  0x14   :  { %994 = vmatprep.subr.bf16.mxu0 %v1085_v6  ;;  %1069 = vmatprep.subr.bf16.mxu1 %v1085_v6 }
  0x17   :  { %995 = vmatpush3.bf16.msra.mxu0 %v1085_v6  ;;  %1077 = vmatpush3.bf16.msra.mxu1 %v1085_v6 }
  0x18   :  { %996 = vmatprep.subr.bf16.mxu0 %v1086_v7  ;;  %1070 = vmatprep.subr.bf16.mxu1 %v1086_v7 }
  0x1b   :  { %997 = vmatpush3.bf16.msra.mxu0 %v1086_v7  ;;  %1078 = vmatpush3.bf16.msra.mxu1 %v1086_v7 }
  0x1c   :  { %998 = vmatprep.subr.bf16.mxu0 %v1087_v8  ;;  %1071 = vmatprep.subr.bf16.mxu1 %v1087_v8 }
  0x1f   :  { %999 = vmatpush3.bf16.msra.mxu0 %v1087_v8  ;;  %1079 = vmatpush3.bf16.msra.mxu1 %v1087_v8 }
  0x22   :  { %1001 = vmatmul.mubr.bf16.vlgmr.msra.gmra.mrb[0].mxu0 %v1089_v10  ;;  %1033 = vmatmul.mubr.bf16.vlgmr.msra.gmra.mrb[0].mxu1 %v1105_v12 }
  0x23   :  { %1004 = vmatprep.mubr.bf16.mxu0 %v1090_v11  ;;  %1036 = vmatprep.mubr.bf16.mxu1 %v1106_v13 }
  0x2a   :  { %1005 = vmatmul.mubr.bf16.gmra.mrb[4].mxu0 %v1091_v14  ;;  %1037 = vmatmul.mubr.bf16.gmra.mrb[4].mxu1 %v1107_v16 }
  0x2b   :  { %1008 = vmatprep.mubr.bf16.mxu0 %v1092_v15  ;;  %1040 = vmatprep.mubr.bf16.mxu1 %v1108_v17 }
  0x32   :  { %1009 = vmatmul.mubr.bf16.gmra.mrb[8].mxu0 %v1093_v18  ;;  %1041 = vmatmul.mubr.bf16.gmra.mrb[8].mxu1 %v1109_v19 }
  0x33   :  { %1012 = vmatprep.mubr.bf16.mxu0 %v1094_v20  ;;  %1044 = vmatprep.mubr.bf16.mxu1 %v1110_v21 }
  0x3a   :  { %1013 = vmatmul.mubr.bf16.gmra.mrb[12].mxu0 %v1095_v22  ;;  %1045 = vmatmul.mubr.bf16.gmra.mrb[12].mxu1 %v1111_v23 }
  0x3b   :  { %1016 = vmatprep.mubr.bf16.mxu0 %v1096_v24  ;;  %1048 = vmatprep.mubr.bf16.mxu1 %v1112_v25 }
  0x42   :  { %1017 = vmatmul.mubr.bf16.gmra.mrb[16].mxu0 %v1097_v26  ;;  %1049 = vmatmul.mubr.bf16.gmra.mrb[16].mxu1 %v1113_v27 }
  0x43   :  { %1020 = vmatprep.mubr.bf16.mxu0 %v1098_v28  ;;  %1052 = vmatprep.mubr.bf16.mxu1 %v1114_v29 }
  0x4a   :  { %1021 = vmatmul.mubr.bf16.gmra.mrb[20].mxu0 %v1099_v30  ;;  %1053 = vmatmul.mubr.bf16.gmra.mrb[20].mxu1 %v1115_v31 }
  0x4b   :  { %1024 = vmatprep.mubr.bf16.mxu0 %v1100_v32  ;;  %1056 = vmatprep.mubr.bf16.mxu1 %v1116_v33 }
  0x52   :  { %1025 = vmatmul.mubr.bf16.gmra.mrb[24].mxu0 %v1101_v34  ;;  %1057 = vmatmul.mubr.bf16.gmra.mrb[24].mxu1 %v1117_v35 }
  0x53   :  { %1028 = vmatprep.mubr.bf16.mxu0 %v1102_v36  ;;  %1060 = vmatprep.mubr.bf16.mxu1 %v1118_v37 }
  0x5a   :  { %1029 = vmatmul.mubr.bf16.gmra.mrb[28].mxu0 %v1103_v38  ;;  %1061 = vmatmul.mubr.bf16.gmra.mrb[28].mxu1 %v1119_v39 }
  0xf5   :  { %v1002_v40 = vpop.f32.mrb[0].mxu0  ;;  %v1265_v41 = vpop.f32.mrb[0].mxu1 }
  0xf6   :  { %626 = vst [vmem:[%s1657_s2 + $0x10] sm:$0xff] %v1002_v40  ;;  %v369_v42 = vpop.f32.mrb[1].mxu0  ;;  %658 = vst [vmem:[%s1657_s2 + $0x110] sm:$0xff] %v1265_v41  ;;  %v1274_v43 = vpop.f32.mrb[1].mxu1  ;;  %v760_v51 = vmul.f32 %v1002_v40, %v1002_v40 }
  0xf7   :  { %624 = vst [vmem:[%s1657_s2] sm:$0xff] %v369_v42  ;;  %v1003_v44 = vpop.f32.mrb[2].mxu0  ;;  %656 = vst [vmem:[%s1657_s2 + $0x100] sm:$0xff] %v1274_v43  ;;  %v1283_v45 = vpop.f32.mrb[2].mxu1  ;;  %v758_v48 = vmul.f32 %v369_v42, %v369_v42 }
  0xf8   :  { %627 = vst [vmem:[%s1657_s2 + $0x18] sm:$0xff] %v1003_v44  ;;  %v372_v46 = vpop.f32.mrb[3].mxu0  ;;  %659 = vst [vmem:[%s1657_s2 + $0x118] sm:$0xff] %v1283_v45  ;;  %v1292_v47 = vpop.f32.mrb[3].mxu1  ;;  %v761_v54 = vmul.f32 %v1003_v44, %v1003_v44 }
  0xf9   :  { %625 = vst [vmem:[%s1657_s2 + $0x8] sm:$0xff] %v372_v46  ;;  %v688_v49 = vadd.f32 %v372_v46, %v369_v42  ;;  %v759_v50 = vmul.f32 %v372_v46, %v372_v46  ;;  %657 = vst [vmem:[%s1657_s2 + $0x108] sm:$0xff] %v1292_v47 }
  0xfb   :  { %v689_v52 = vadd.f32 %v1002_v40, %v688_v49  ;;  %v822_v53 = vadd.f32 %v759_v50, %v758_v48 }
  0xfd   :  { %v823_v55 = vadd.f32 %v822_v53, %v760_v51  ;;  %v1006_v56 = vpop.f32.mrb[4].mxu0  ;;  %v690_v57 = vadd.f32 %v1003_v44, %v689_v52  ;;  %v1301_v58 = vpop.f32.mrb[4].mxu1 }
  0xfe   :  { %630 = vst [vmem:[%s1657_s2 + $0x30] sm:$0xff] %v1006_v56  ;;  %v385_v59 = vpop.f32.mrb[5].mxu0  ;;  %662 = vst [vmem:[%s1657_s2 + $0x130] sm:$0xff] %v1301_v58  ;;  %v1310_v60 = vpop.f32.mrb[5].mxu1  ;;  %v764_v7 = vmul.f32 %v1006_v56, %v1006_v56 }
  0xff   :  { %628 = vst [vmem:[%s1657_s2 + $0x20] sm:$0xff] %v385_v59  ;;  %v691_v61 = vadd.f32 %v690_v57, %v385_v59  ;;  %v762_v62 = vmul.f32 %v385_v59, %v385_v59  ;;  %v824_v63 = vadd.f32 %v823_v55, %v761_v54  ;;  %v1007_v0 = vpop.f32.mrb[6].mxu0  ;;  %660 = vst [vmem:[%s1657_s2 + $0x120] sm:$0xff] %v1310_v60  ;;  %v1319_v1 = vpop.f32.mrb[6].mxu1 }
 0x100   :  { %631 = vst [vmem:[%s1657_s2 + $0x38] sm:$0xff] %v1007_v0  ;;  %v388_v2 = vpop.f32.mrb[7].mxu0  ;;  %663 = vst [vmem:[%s1657_s2 + $0x138] sm:$0xff] %v1319_v1  ;;  %v1328_v3 = vpop.f32.mrb[7].mxu1  ;;  %v765_v10 = vmul.f32 %v1007_v0, %v1007_v0 }
 0x101   :  { %v825_v4 = vadd.f32 %v824_v63, %v762_v62  ;;  %629 = vst [vmem:[%s1657_s2 + $0x28] sm:$0xff] %v388_v2  ;;  %v692_v5 = vadd.f32 %v691_v61, %v388_v2  ;;  %v763_v6 = vmul.f32 %v388_v2, %v388_v2  ;;  %661 = vst [vmem:[%s1657_s2 + $0x128] sm:$0xff] %v1328_v3 }
 0x103   :  { %v693_v8 = vadd.f32 %v1006_v56, %v692_v5  ;;  %v826_v9 = vadd.f32 %v825_v4, %v763_v6 }
 0x105   :  { %v827_v11 = vadd.f32 %v826_v9, %v764_v7  ;;  %v1010_v12 = vpop.f32.mrb[8].mxu0  ;;  %v694_v13 = vadd.f32 %v1007_v0, %v693_v8  ;;  %v1337_v14 = vpop.f32.mrb[8].mxu1 }
 0x106   :  { %634 = vst [vmem:[%s1657_s2 + $0x50] sm:$0xff] %v1010_v12  ;;  %v401_v15 = vpop.f32.mrb[9].mxu0  ;;  %666 = vst [vmem:[%s1657_s2 + $0x150] sm:$0xff] %v1337_v14  ;;  %v1346_v16 = vpop.f32.mrb[9].mxu1  ;;  %v768_v27 = vmul.f32 %v1010_v12, %v1010_v12 }
 0x107   :  { %632 = vst [vmem:[%s1657_s2 + $0x40] sm:$0xff] %v401_v15  ;;  %v695_v17 = vadd.f32 %v694_v13, %v401_v15  ;;  %v766_v18 = vmul.f32 %v401_v15, %v401_v15  ;;  %v828_v19 = vadd.f32 %v827_v11, %v765_v10  ;;  %v1011_v20 = vpop.f32.mrb[10].mxu0  ;;  %664 = vst [vmem:[%s1657_s2 + $0x140] sm:$0xff] %v1346_v16  ;;  %v1355_v21 = vpop.f32.mrb[10].mxu1 }
 0x108   :  { %635 = vst [vmem:[%s1657_s2 + $0x58] sm:$0xff] %v1011_v20  ;;  %v404_v22 = vpop.f32.mrb[11].mxu0  ;;  %667 = vst [vmem:[%s1657_s2 + $0x158] sm:$0xff] %v1355_v21  ;;  %v1364_v23 = vpop.f32.mrb[11].mxu1  ;;  %v769_v30 = vmul.f32 %v1011_v20, %v1011_v20 }
 0x109   :  { %v829_v24 = vadd.f32 %v828_v19, %v766_v18  ;;  %633 = vst [vmem:[%s1657_s2 + $0x48] sm:$0xff] %v404_v22  ;;  %v696_v25 = vadd.f32 %v695_v17, %v404_v22  ;;  %v767_v26 = vmul.f32 %v404_v22, %v404_v22  ;;  %665 = vst [vmem:[%s1657_s2 + $0x148] sm:$0xff] %v1364_v23 }
 0x10b   :  { %v697_v28 = vadd.f32 %v1010_v12, %v696_v25  ;;  %v830_v29 = vadd.f32 %v829_v24, %v767_v26 }
 0x10d   :  { %v831_v31 = vadd.f32 %v830_v29, %v768_v27  ;;  %v1014_v32 = vpop.f32.mrb[12].mxu0  ;;  %v698_v33 = vadd.f32 %v1011_v20, %v697_v28  ;;  %v1373_v34 = vpop.f32.mrb[12].mxu1 }
 0x10e   :  { %638 = vst [vmem:[%s1657_s2 + $0x70] sm:$0xff] %v1014_v32  ;;  %v417_v35 = vpop.f32.mrb[13].mxu0  ;;  %670 = vst [vmem:[%s1657_s2 + $0x170] sm:$0xff] %v1373_v34  ;;  %v1382_v36 = vpop.f32.mrb[13].mxu1  ;;  %v772_v51 = vmul.f32 %v1014_v32, %v1014_v32 }
 0x10f   :  { %636 = vst [vmem:[%s1657_s2 + $0x60] sm:$0xff] %v417_v35  ;;  %v699_v37 = vadd.f32 %v698_v33, %v417_v35  ;;  %v770_v38 = vmul.f32 %v417_v35, %v417_v35  ;;  %v832_v39 = vadd.f32 %v831_v31, %v769_v30  ;;  %v1015_v40 = vpop.f32.mrb[14].mxu0  ;;  %668 = vst [vmem:[%s1657_s2 + $0x160] sm:$0xff] %v1382_v36  ;;  %v1391_v42 = vpop.f32.mrb[14].mxu1 }
 0x110   :  { %639 = vst [vmem:[%s1657_s2 + $0x78] sm:$0xff] %v1015_v40  ;;  %v420_v44 = vpop.f32.mrb[15].mxu0  ;;  %671 = vst [vmem:[%s1657_s2 + $0x178] sm:$0xff] %v1391_v42  ;;  %v1400_v46 = vpop.f32.mrb[15].mxu1  ;;  %v773_v54 = vmul.f32 %v1015_v40, %v1015_v40 }
 0x111   :  { %v833_v48 = vadd.f32 %v832_v39, %v770_v38  ;;  %637 = vst [vmem:[%s1657_s2 + $0x68] sm:$0xff] %v420_v44  ;;  %v700_v49 = vadd.f32 %v699_v37, %v420_v44  ;;  %v771_v50 = vmul.f32 %v420_v44, %v420_v44  ;;  %669 = vst [vmem:[%s1657_s2 + $0x168] sm:$0xff] %v1400_v46 }
 0x113   :  { %v701_v52 = vadd.f32 %v1014_v32, %v700_v49  ;;  %v834_v53 = vadd.f32 %v833_v48, %v771_v50 }
 0x115   :  { %v835_v55 = vadd.f32 %v834_v53, %v772_v51  ;;  %v1018_v56 = vpop.f32.mrb[16].mxu0  ;;  %v702_v57 = vadd.f32 %v1015_v40, %v701_v52  ;;  %v1409_v59 = vpop.f32.mrb[16].mxu1 }
 0x116   :  { %642 = vst [vmem:[%s1657_s2 + $0x90] sm:$0xff] %v1018_v56  ;;  %v433_v61 = vpop.f32.mrb[17].mxu0  ;;  %674 = vst [vmem:[%s1657_s2 + $0x190] sm:$0xff] %v1409_v59  ;;  %v1418_v62 = vpop.f32.mrb[17].mxu1  ;;  %v776_v11 = vmul.f32 %v1018_v56, %v1018_v56 }
 0x117   :  { %640 = vst [vmem:[%s1657_s2 + $0x80] sm:$0xff] %v433_v61  ;;  %v703_v63 = vadd.f32 %v702_v57, %v433_v61  ;;  %v774_v0 = vmul.f32 %v433_v61, %v433_v61  ;;  %v836_v2 = vadd.f32 %v835_v55, %v773_v54  ;;  %v1019_v4 = vpop.f32.mrb[18].mxu0  ;;  %672 = vst [vmem:[%s1657_s2 + $0x180] sm:$0xff] %v1418_v62  ;;  %v1427_v5 = vpop.f32.mrb[18].mxu1 }
 0x118   :  { %643 = vst [vmem:[%s1657_s2 + $0x98] sm:$0xff] %v1019_v4  ;;  %v436_v6 = vpop.f32.mrb[19].mxu0  ;;  %675 = vst [vmem:[%s1657_s2 + $0x198] sm:$0xff] %v1427_v5  ;;  %v1436_v7 = vpop.f32.mrb[19].mxu1  ;;  %v777_v15 = vmul.f32 %v1019_v4, %v1019_v4 }
 0x119   :  { %v837_v8 = vadd.f32 %v836_v2, %v774_v0  ;;  %641 = vst [vmem:[%s1657_s2 + $0x88] sm:$0xff] %v436_v6  ;;  %v704_v9 = vadd.f32 %v703_v63, %v436_v6  ;;  %v775_v10 = vmul.f32 %v436_v6, %v436_v6  ;;  %673 = vst [vmem:[%s1657_s2 + $0x188] sm:$0xff] %v1436_v7 }
 0x11b   :  { %v705_v12 = vadd.f32 %v1018_v56, %v704_v9  ;;  %v838_v13 = vadd.f32 %v837_v8, %v775_v10 }
 0x11d   :  { %v839_v17 = vadd.f32 %v838_v13, %v776_v11  ;;  %v1022_v18 = vpop.f32.mrb[20].mxu0  ;;  %v706_v19 = vadd.f32 %v1019_v4, %v705_v12  ;;  %v1445_v20 = vpop.f32.mrb[20].mxu1 }
 0x11e   :  { %646 = vst [vmem:[%s1657_s2 + $0xb0] sm:$0xff] %v1022_v18  ;;  %v449_v22 = vpop.f32.mrb[21].mxu0  ;;  %678 = vst [vmem:[%s1657_s2 + $0x1b0] sm:$0xff] %v1445_v20  ;;  %v1454_v24 = vpop.f32.mrb[21].mxu1  ;;  %v780_v37 = vmul.f32 %v1022_v18, %v1022_v18 }
 0x11f   :  { %644 = vst [vmem:[%s1657_s2 + $0xa0] sm:$0xff] %v449_v22  ;;  %v707_v25 = vadd.f32 %v706_v19, %v449_v22  ;;  %v778_v26 = vmul.f32 %v449_v22, %v449_v22  ;;  %v840_v27 = vadd.f32 %v839_v17, %v777_v15  ;;  %v1023_v28 = vpop.f32.mrb[22].mxu0  ;;  %676 = vst [vmem:[%s1657_s2 + $0x1a0] sm:$0xff] %v1454_v24  ;;  %v1463_v29 = vpop.f32.mrb[22].mxu1 }
 0x120   :  { %647 = vst [vmem:[%s1657_s2 + $0xb8] sm:$0xff] %v1023_v28  ;;  %v452_v30 = vpop.f32.mrb[23].mxu0  ;;  %679 = vst [vmem:[%s1657_s2 + $0x1b8] sm:$0xff] %v1463_v29  ;;  %v1472_v31 = vpop.f32.mrb[23].mxu1  ;;  %v781_v40 = vmul.f32 %v1023_v28, %v1023_v28 }
 0x121   :  { %v841_v32 = vadd.f32 %v840_v27, %v778_v26  ;;  %645 = vst [vmem:[%s1657_s2 + $0xa8] sm:$0xff] %v452_v30  ;;  %v708_v33 = vadd.f32 %v707_v25, %v452_v30  ;;  %v779_v35 = vmul.f32 %v452_v30, %v452_v30  ;;  %677 = vst [vmem:[%s1657_s2 + $0x1a8] sm:$0xff] %v1472_v31 }
 0x123   :  { %v709_v38 = vadd.f32 %v1022_v18, %v708_v33  ;;  %v842_v39 = vadd.f32 %v841_v32, %v779_v35 }
 0x125   :  { %v843_v44 = vadd.f32 %v842_v39, %v780_v37  ;;  %v1026_v48 = vpop.f32.mrb[24].mxu0  ;;  %v710_v49 = vadd.f32 %v1023_v28, %v709_v38  ;;  %v1481_v50 = vpop.f32.mrb[24].mxu1 }
 0x126   :  { %650 = vst [vmem:[%s1657_s2 + $0xd0] sm:$0xff] %v1026_v48  ;;  %v465_v51 = vpop.f32.mrb[25].mxu0  ;;  %682 = vst [vmem:[%s1657_s2 + $0x1d0] sm:$0xff] %v1481_v50  ;;  %v1490_v52 = vpop.f32.mrb[25].mxu1  ;;  %v784_v6 = vmul.f32 %v1026_v48, %v1026_v48 }
 0x127   :  { %648 = vst [vmem:[%s1657_s2 + $0xc0] sm:$0xff] %v465_v51  ;;  %v711_v53 = vadd.f32 %v710_v49, %v465_v51  ;;  %v782_v54 = vmul.f32 %v465_v51, %v465_v51  ;;  %v844_v55 = vadd.f32 %v843_v44, %v781_v40  ;;  %v1027_v56 = vpop.f32.mrb[26].mxu0  ;;  %680 = vst [vmem:[%s1657_s2 + $0x1c0] sm:$0xff] %v1490_v52  ;;  %v1499_v57 = vpop.f32.mrb[26].mxu1 }
 0x128   :  { %651 = vst [vmem:[%s1657_s2 + $0xd8] sm:$0xff] %v1027_v56  ;;  %v468_v61 = vpop.f32.mrb[27].mxu0  ;;  %683 = vst [vmem:[%s1657_s2 + $0x1d8] sm:$0xff] %v1499_v57  ;;  %v1508_v63 = vpop.f32.mrb[27].mxu1  ;;  %v785_v10 = vmul.f32 %v1027_v56, %v1027_v56  ;;  %v790_v49 = vmul.f32 %v1274_v43, %v1274_v43 }
 0x129   :  { %v845_v0 = vadd.f32 %v844_v55, %v782_v54  ;;  %649 = vst [vmem:[%s1657_s2 + $0xc8] sm:$0xff] %v468_v61  ;;  %v712_v2 = vadd.f32 %v711_v53, %v468_v61  ;;  %v783_v4 = vmul.f32 %v468_v61, %v468_v61  ;;  %681 = vst [vmem:[%s1657_s2 + $0x1c8] sm:$0xff] %v1508_v63 }
 0x12a   :  { %v792_v61 = vmul.f32 %v1265_v41, %v1265_v41 }
 0x12b   :  { %v713_v8 = vadd.f32 %v1026_v48, %v712_v2  ;;  %v846_v9 = vadd.f32 %v845_v0, %v783_v4  ;;  %v793_v4 = vmul.f32 %v1283_v45, %v1283_v45 }
 0x12d   :  { %v847_v11 = vadd.f32 %v846_v9, %v784_v6  ;;  %v1030_v12 = vpop.f32.mrb[28].mxu0  ;;  %v714_v13 = vadd.f32 %v1027_v56, %v713_v8  ;;  %v1517_v15 = vpop.f32.mrb[28].mxu1  ;;  %v791_v56 = vmul.f32 %v1292_v47, %v1292_v47 }
 0x12e   :  { %654 = vst [vmem:[%s1657_s2 + $0xf0] sm:$0xff] %v1030_v12  ;;  %v481_v17 = vpop.f32.mrb[29].mxu0  ;;  %686 = vst [vmem:[%s1657_s2 + $0x1f0] sm:$0xff] %v1517_v15  ;;  %v1526_v18 = vpop.f32.mrb[29].mxu1  ;;  %v788_v37 = vmul.f32 %v1030_v12, %v1030_v12 }
 0x12f   :  { %652 = vst [vmem:[%s1657_s2 + $0xe0] sm:$0xff] %v481_v17  ;;  %v715_v19 = vadd.f32 %v714_v13, %v481_v17  ;;  %v786_v22 = vmul.f32 %v481_v17, %v481_v17  ;;  %v848_v25 = vadd.f32 %v847_v11, %v785_v10  ;;  %v1031_v26 = vpop.f32.mrb[30].mxu0  ;;  %684 = vst [vmem:[%s1657_s2 + $0x1e0] sm:$0xff] %v1526_v18  ;;  %v1535_v27 = vpop.f32.mrb[30].mxu1 }
 0x130   :  { %655 = vst [vmem:[%s1657_s2 + $0xf8] sm:$0xff] %v1031_v26  ;;  %v484_v28 = vpop.f32.mrb[31].mxu0  ;;  %687 = vst [vmem:[%s1657_s2 + $0x1f8] sm:$0xff] %v1535_v27  ;;  %v1544_v30 = vpop.f32.mrb[31].mxu1  ;;  %v789_v40 = vmul.f32 %v1031_v26, %v1031_v26 }
 0x131   :  { %v849_v32 = vadd.f32 %v848_v25, %v786_v22  ;;  %653 = vst [vmem:[%s1657_s2 + $0xe8] sm:$0xff] %v484_v28  ;;  %v716_v33 = vadd.f32 %v715_v19, %v484_v28  ;;  %v787_v35 = vmul.f32 %v484_v28, %v484_v28  ;;  %685 = vst [vmem:[%s1657_s2 + $0x1e8] sm:$0xff] %v1544_v30 }
 0x133   :  { %v717_v38 = vadd.f32 %v1030_v12, %v716_v33  ;;  %v850_v39 = vadd.f32 %v849_v32, %v787_v35  ;;  %v795_v12 = vmul.f32 %v1328_v3, %v1328_v3  ;;  %v799_v32 = vmul.f32 %v1364_v23, %v1364_v23 }
 0x135   :  { %v851_v44 = vadd.f32 %v850_v39, %v788_v37  ;;  %v718_v48 = vadd.f32 %v1031_v26, %v717_v38 }
 0x137   :  { %v719_v51 = vadd.f32 %v718_v48, %v1274_v43  ;;  %v852_v53 = vadd.f32 %v851_v44, %v789_v40  ;;  %v794_v43 = vmul.f32 %v1310_v60, %v1310_v60  ;;  %v803_v48 = vmul.f32 %v1400_v46, %v1400_v46 }
 0x139   :  { %v853_v54 = vadd.f32 %v852_v53, %v790_v49  ;;  %v720_v55 = vadd.f32 %v719_v51, %v1292_v47 }
 0x13b   :  { %v721_v0 = vadd.f32 %v1265_v41, %v720_v55  ;;  %v854_v2 = vadd.f32 %v853_v54, %v791_v56  ;;  %v796_v41 = vmul.f32 %v1301_v58, %v1301_v58 }
 0x13d   :  { %v855_v6 = vadd.f32 %v854_v2, %v792_v61  ;;  %v722_v8 = vadd.f32 %v1283_v45, %v721_v0  ;;  %v797_v45 = vmul.f32 %v1319_v1, %v1319_v1  ;;  %v807_v0 = vmul.f32 %v1436_v7, %v1436_v7 }
 0x13f   :  { %v723_v9 = vadd.f32 %v722_v8, %v1310_v60  ;;  %v856_v10 = vadd.f32 %v855_v6, %v793_v4  ;;  %v798_v60 = vmul.f32 %v1346_v16, %v1346_v16 }
 0x141   :  { %v857_v11 = vadd.f32 %v856_v10, %v794_v43  ;;  %v724_v47 = vadd.f32 %v723_v9, %v1328_v3 }
 0x143   :  { %v725_v13 = vadd.f32 %v1301_v58, %v724_v47  ;;  %v858_v17 = vadd.f32 %v857_v11, %v795_v12  ;;  %v800_v58 = vmul.f32 %v1337_v14, %v1337_v14  ;;  %v811_v11 = vmul.f32 %v1472_v31, %v1472_v31 }
 0x145   :  { %v859_v19 = vadd.f32 %v858_v17, %v796_v41  ;;  %v726_v22 = vadd.f32 %v1319_v1, %v725_v13  ;;  %v801_v1 = vmul.f32 %v1355_v21, %v1355_v21 }
 0x147   :  { %v727_v25 = vadd.f32 %v726_v22, %v1346_v16  ;;  %v860_v26 = vadd.f32 %v859_v19, %v797_v45  ;;  %v802_v16 = vmul.f32 %v1382_v36, %v1382_v36  ;;  %v815_v22 = vmul.f32 %v1508_v63, %v1508_v63 }
 0x149   :  { %v861_v28 = vadd.f32 %v860_v26, %v798_v60  ;;  %v728_v3 = vadd.f32 %v727_v25, %v1364_v23 }
 0x14b   :  { %v729_v33 = vadd.f32 %v1337_v14, %v728_v3  ;;  %v862_v35 = vadd.f32 %v861_v28, %v799_v32  ;;  %v804_v14 = vmul.f32 %v1373_v34, %v1373_v34 }
 0x14d   :  { %v863_v37 = vadd.f32 %v862_v35, %v800_v58  ;;  %v730_v38 = vadd.f32 %v1355_v21, %v729_v33  ;;  %v805_v21 = vmul.f32 %v1391_v42, %v1391_v42  ;;  %v819_v33 = vmul.f32 %v1544_v30, %v1544_v30 }
 0x14f   :  { %v731_v39 = vadd.f32 %v730_v38, %v1382_v36  ;;  %v864_v40 = vadd.f32 %v863_v37, %v801_v1  ;;  %v806_v36 = vmul.f32 %v1418_v62, %v1418_v62 }
 0x151   :  { %v865_v44 = vadd.f32 %v864_v40, %v802_v16  ;;  %v732_v23 = vadd.f32 %v731_v39, %v1400_v46 }
 0x153   :  { %v733_v49 = vadd.f32 %v1373_v34, %v732_v23  ;;  %v866_v51 = vadd.f32 %v865_v44, %v803_v48  ;;  %v808_v34 = vmul.f32 %v1409_v59, %v1409_v59 }
 0x155   :  { %v867_v53 = vadd.f32 %v866_v51, %v804_v14  ;;  %v734_v54 = vadd.f32 %v1391_v42, %v733_v49  ;;  %v809_v42 = vmul.f32 %v1427_v5, %v1427_v5 }
 0x157   :  { %v735_v55 = vadd.f32 %v734_v54, %v1418_v62  ;;  %v868_v56 = vadd.f32 %v867_v53, %v805_v21  ;;  %v810_v62 = vmul.f32 %v1454_v24, %v1454_v24 }
 0x159   :  { %v869_v61 = vadd.f32 %v868_v56, %v806_v36  ;;  %v736_v46 = vadd.f32 %v735_v55, %v1436_v7 }
 0x15b   :  { %v737_v2 = vadd.f32 %v1409_v59, %v736_v46  ;;  %v870_v4 = vadd.f32 %v869_v61, %v807_v0  ;;  %v812_v59 = vmul.f32 %v1445_v20, %v1445_v20 }
 0x15d   :  { %v871_v6 = vadd.f32 %v870_v4, %v808_v34  ;;  %v738_v8 = vadd.f32 %v1427_v5, %v737_v2  ;;  %v813_v5 = vmul.f32 %v1463_v29, %v1463_v29 }
 0x15f   :  { %v739_v43 = vadd.f32 %v738_v8, %v1454_v24  ;;  %v872_v9 = vadd.f32 %v871_v6, %v809_v42  ;;  %v814_v24 = vmul.f32 %v1490_v52, %v1490_v52 }
 0x161   :  { %v873_v10 = vadd.f32 %v872_v9, %v810_v62  ;;  %v740_v7 = vadd.f32 %v739_v43, %v1472_v31 }
 0x163   :  { %v741_v47 = vadd.f32 %v1445_v20, %v740_v7  ;;  %v874_v12 = vadd.f32 %v873_v10, %v811_v11  ;;  %v816_v20 = vmul.f32 %v1481_v50, %v1481_v50 }
 0x165   :  { %v875_v41 = vadd.f32 %v874_v12, %v812_v59  ;;  %v742_v13 = vadd.f32 %v1463_v29, %v741_v47  ;;  %v817_v29 = vmul.f32 %v1499_v57, %v1499_v57 }
 0x167   :  { %v743_v17 = vadd.f32 %v742_v13, %v1490_v52  ;;  %v876_v45 = vadd.f32 %v875_v41, %v813_v5  ;;  %v818_v52 = vmul.f32 %v1526_v18, %v1526_v18 }
 0x169   :  { %v877_v19 = vadd.f32 %v876_v45, %v814_v24  ;;  %v744_v31 = vadd.f32 %v743_v17, %v1508_v63 }
 0x16b   :  { %v745_v60 = vadd.f32 %v1481_v50, %v744_v31  ;;  %v878_v25 = vadd.f32 %v877_v19, %v815_v22  ;;  %v820_v50 = vmul.f32 %v1517_v15, %v1517_v15 }
 0x16d   :  { %v879_v26 = vadd.f32 %v878_v25, %v816_v20  ;;  %v746_v28 = vadd.f32 %v1499_v57, %v745_v60  ;;  %v821_v57 = vmul.f32 %v1535_v27, %v1535_v27 }
 0x16f   :  { %v747_v3 = vadd.f32 %v746_v28, %v1526_v18  ;;  %v880_v32 = vadd.f32 %v879_v26, %v817_v29 }
 0x171   :  { %v881_v58 = vadd.f32 %v880_v32, %v818_v52  ;;  %v748_v63 = vadd.f32 %v747_v3, %v1544_v30 }
 0x173   :  { %v749_v35 = vadd.f32 %v1517_v15, %v748_v63  ;;  %v882_v1 = vadd.f32 %v881_v58, %v819_v33 }
 0x175   :  { %v750_v37 = vadd.f32 %v1535_v27, %v749_v35  ;;  %v883_v38 = vadd.f32 %v882_v1, %v820_v50 }
 0x177   :  { %v751_v18 = vrot.slane %v750_v37, 4  ;;  %v884_v16 = vadd.f32 %v883_v38, %v821_v57 }
 0x179   :  { %v752_v39 = vadd.f32 %v751_v18, %v750_v37  ;;  %v885_v40 = vrot.slane %v884_v16, 4 }
 0x17b   :  { %v753_v44 = vrot.slane %v752_v39, 2  ;;  %v886_v23 = vadd.f32 %v885_v40, %v884_v16 }
 0x17d   :  { %v754_v48 = vadd.f32 %v753_v44, %v752_v39  ;;  %v887_v30 = vrot.slane %v886_v23, 2 }
 0x17f   :  { %v755_v14 = vrot.slane %v754_v48, 1  ;;  %v888_v49 = vadd.f32 %v887_v30, %v886_v23 }
 0x181   :  { %v756_v51 = vadd.f32 %v755_v14, %v754_v48  ;;  %v889_v21 = vrot.slane %v888_v49, 1 }
 0x183   :  { %757 = vst [vmem:[%s1658_s3] sm:$0x1] %v756_v51  ;;  %v890_v15 = vadd.f32 %v889_v21, %v888_v49 }
 0x185   :  { %891 = vst [vmem:[%s1659_s4] sm:$0x1] %v890_v15 }

// kernel: double_conv.7
= control target key start
LH: loop header
LB: loop body
LE: loop exit
PB: predicated region body
PF: predicated region fallthrough
CT: control target
= control target key end

     0   :  { %s896_s0 = inlined_call_operand.vmem [shape: f32[512,128], index: 0, kind: input, shape index: {}]   ;;  %s897_s1 = inlined_call_operand.vmem [shape: f32[1,128], index: 1, kind: input, shape index: {}]   ;;  %s898_s2 = inlined_call_operand.vmem [shape: f32[1,128], index: 2, kind: input, shape index: {}]   ;;  %s899_s3 = inlined_call_operand.vmem [shape: f32[512,128], index: 3, kind: output, shape index: {}]  }
   0x1   :  { %v14_v0 = vld [vmem:[%s896_s0] sm:$0xff]  ;;  %v15_v4 = vld [vmem:[%s896_s0 + $0x8] sm:$0xff]  ;;  %v16_v5 = vld [vmem:[%s896_s0 + $0x10] sm:$0xff] }
   0x2   :  { %v380_v1 = vld [vmem:[%s897_s1] ss:$0 sm:$0xff]  ;;  %v17_v6 = vld [vmem:[%s896_s0 + $0x18] sm:$0xff]  ;;  %v19_v11 = vld [vmem:[%s896_s0 + $0x28] sm:$0xff] }
   0x3   :  { %v385_v2 = vld [vmem:[%s898_s2] ss:$0 sm:$0xff]  ;;  %v85_v3 = vmul.f32 %v380_v1, %v14_v0  ;;  %v86_v7 = vmul.f32 %v380_v1, %v15_v4  ;;  %v87_v8 = vmul.f32 %v380_v1, %v16_v5  ;;  %v88_v9 = vmul.f32 %v380_v1, %v17_v6  ;;  %v20_v12 = vld [vmem:[%s896_s0 + $0x30] sm:$0xff]  ;;  %v21_v17 = vld [vmem:[%s896_s0 + $0x38] sm:$0xff] }
   0x4   :  { %v18_v10 = vld [vmem:[%s896_s0 + $0x20] sm:$0xff]  ;;  %v90_v15 = vmul.f32 %v380_v1, %v19_v11  ;;  %v91_v16 = vmul.f32 %v380_v1, %v20_v12  ;;  %v92_v21 = vmul.f32 %v380_v1, %v21_v17  ;;  %v23_v27 = vld [vmem:[%s896_s0 + $0x48] sm:$0xff]  ;;  %v24_v28 = vld [vmem:[%s896_s0 + $0x50] sm:$0xff] }
   0x5   :  { %v156_v13 = vadd.f32 %v385_v2, %v85_v3  ;;  %v89_v14 = vmul.f32 %v380_v1, %v18_v10  ;;  %v157_v18 = vadd.f32 %v385_v2, %v86_v7  ;;  %v158_v19 = vadd.f32 %v385_v2, %v87_v8  ;;  %v22_v22 = vld [vmem:[%s896_s0 + $0x40] sm:$0xff]  ;;  %v25_v29 = vld [vmem:[%s896_s0 + $0x58] sm:$0xff]  ;;  %v27_v35 = vld [vmem:[%s896_s0 + $0x68] sm:$0xff] }
   0x6   :  { %v159_v20 = vadd.f32 %v385_v2, %v88_v9  ;;  %v161_v25 = vadd.f32 %v385_v2, %v90_v15  ;;  %v162_v26 = vadd.f32 %v385_v2, %v91_v16  ;;  %v163_v33 = vadd.f32 %v385_v2, %v92_v21  ;;  %v26_v34 = vld [vmem:[%s896_s0 + $0x60] sm:$0xff]  ;;  %v28_v36 = vld [vmem:[%s896_s0 + $0x70] sm:$0xff]  ;;  %v29_v41 = vld [vmem:[%s896_s0 + $0x78] sm:$0xff] }
   0x7   :  { %v220_v23 = vmax.f32 %v156_v13, 0.0  ;;  %v160_v24 = vadd.f32 %v385_v2, %v89_v14  ;;  %v221_v30 = vmax.f32 %v157_v18, 0.0  ;;  %v222_v31 = vmax.f32 %v158_v19, 0.0  ;;  %v30_v54 = vld [vmem:[%s896_s0 + $0x80] sm:$0xff]  ;;  %v31_v59 = vld [vmem:[%s896_s0 + $0x88] sm:$0xff]  ;;  %v32_v60 = vld [vmem:[%s896_s0 + $0x90] sm:$0xff] }
   0x8   :  { %v223_v32 = vmax.f32 %v159_v20, 0.0  ;;  %v225_v38 = vmax.f32 %v161_v25, 0.0  ;;  %v226_v39 = vmax.f32 %v162_v26, 0.0  ;;  %v93_v40 = vmul.f32 %v380_v1, %v22_v22  ;;  %v33_v61 = vld [vmem:[%s896_s0 + $0x98] sm:$0xff]  ;;  %v34_v4 = vld [vmem:[%s896_s0 + $0xa0] sm:$0xff]  ;;  %v35_v5 = vld [vmem:[%s896_s0 + $0xa8] sm:$0xff] }
   0x9   :  { %284 = vst [vmem:[%s899_s3] sm:$0xff] %v220_v23  ;;  %v224_v37 = vmax.f32 %v160_v24, 0.0  ;;  %285 = vst [vmem:[%s899_s3 + $0x8] sm:$0xff] %v221_v30  ;;  %v227_v42 = vmax.f32 %v163_v33, 0.0  ;;  %v94_v43 = vmul.f32 %v380_v1, %v23_v27  ;;  %v95_v44 = vmul.f32 %v380_v1, %v24_v28  ;;  %v36_v6 = vld [vmem:[%s896_s0 + $0xb0] sm:$0xff]  ;;  %v37_v11 = vld [vmem:[%s896_s0 + $0xb8] sm:$0xff] }
   0xa   :  { %286 = vst [vmem:[%s899_s3 + $0x10] sm:$0xff] %v222_v31  ;;  %287 = vst [vmem:[%s899_s3 + $0x18] sm:$0xff] %v223_v32  ;;  %v96_v45 = vmul.f32 %v380_v1, %v25_v29  ;;  %v164_v46 = vadd.f32 %v385_v2, %v93_v40  ;;  %v97_v47 = vmul.f32 %v380_v1, %v26_v34  ;;  %v38_v24 = vld [vmem:[%s896_s0 + $0xc0] sm:$0xff]  ;;  %v39_v29 = vld [vmem:[%s896_s0 + $0xc8] sm:$0xff] }
   0xb   :  { %288 = vst [vmem:[%s899_s3 + $0x20] sm:$0xff] %v224_v37  ;;  %289 = vst [vmem:[%s899_s3 + $0x28] sm:$0xff] %v225_v38  ;;  %v98_v48 = vmul.f32 %v380_v1, %v27_v35  ;;  %v99_v49 = vmul.f32 %v380_v1, %v28_v36  ;;  %v165_v50 = vadd.f32 %v385_v2, %v94_v43  ;;  %v40_v30 = vld [vmem:[%s896_s0 + $0xd0] sm:$0xff]  ;;  %v41_v31 = vld [vmem:[%s896_s0 + $0xd8] sm:$0xff] }
   0xc   :  { %290 = vst [vmem:[%s899_s3 + $0x30] sm:$0xff] %v226_v39  ;;  %291 = vst [vmem:[%s899_s3 + $0x38] sm:$0xff] %v227_v42  ;;  %v166_v51 = vadd.f32 %v385_v2, %v95_v44  ;;  %v167_v52 = vadd.f32 %v385_v2, %v96_v45  ;;  %v100_v53 = vmul.f32 %v380_v1, %v29_v41  ;;  %v228_v55 = vmax.f32 %v164_v46, 0.0  ;;  %v42_v36 = vld [vmem:[%s896_s0 + $0xe0] sm:$0xff]  ;;  %v43_v37 = vld [vmem:[%s896_s0 + $0xe8] sm:$0xff] }
   0xd   :  { %v168_v56 = vadd.f32 %v385_v2, %v97_v47  ;;  %v169_v57 = vadd.f32 %v385_v2, %v98_v48  ;;  %v170_v58 = vadd.f32 %v385_v2, %v99_v49  ;;  %v229_v62 = vmax.f32 %v165_v50, 0.0  ;;  %v44_v38 = vld [vmem:[%s896_s0 + $0xf0] sm:$0xff]  ;;  %v45_v43 = vld [vmem:[%s896_s0 + $0xf8] sm:$0xff] }
   0xe   :  { %v230_v63 = vmax.f32 %v166_v51, 0.0  ;;  %v231_v0 = vmax.f32 %v167_v52, 0.0  ;;  %v171_v3 = vadd.f32 %v385_v2, %v100_v53  ;;  %292 = vst [vmem:[%s899_s3 + $0x40] sm:$0xff] %v228_v55  ;;  %v101_v10 = vmul.f32 %v380_v1, %v30_v54 }
   0xf   :  { %v232_v7 = vmax.f32 %v168_v56, 0.0  ;;  %v233_v8 = vmax.f32 %v169_v57, 0.0  ;;  %v234_v9 = vmax.f32 %v170_v58, 0.0  ;;  %293 = vst [vmem:[%s899_s3 + $0x48] sm:$0xff] %v229_v62  ;;  %v102_v13 = vmul.f32 %v380_v1, %v31_v59  ;;  %v46_v56 = vld [vmem:[%s896_s0 + $0x100] sm:$0xff]  ;;  %v48_v62 = vld [vmem:[%s896_s0 + $0x110] sm:$0xff] }
  0x10   :  { %294 = vst [vmem:[%s899_s3 + $0x50] sm:$0xff] %v230_v63  ;;  %295 = vst [vmem:[%s899_s3 + $0x58] sm:$0xff] %v231_v0  ;;  %v235_v12 = vmax.f32 %v171_v3, 0.0  ;;  %v103_v14 = vmul.f32 %v380_v1, %v32_v60  ;;  %v104_v15 = vmul.f32 %v380_v1, %v33_v61  ;;  %v172_v16 = vadd.f32 %v385_v2, %v101_v10  ;;  %v47_v61 = vld [vmem:[%s896_s0 + $0x108] sm:$0xff]  ;;  %v49_v63 = vld [vmem:[%s896_s0 + $0x118] sm:$0xff] }
  0x11   :  { %296 = vst [vmem:[%s899_s3 + $0x60] sm:$0xff] %v232_v7  ;;  %297 = vst [vmem:[%s899_s3 + $0x68] sm:$0xff] %v233_v8  ;;  %v105_v17 = vmul.f32 %v380_v1, %v34_v4  ;;  %v106_v18 = vmul.f32 %v380_v1, %v35_v5  ;;  %v107_v19 = vmul.f32 %v380_v1, %v36_v6  ;;  %v50_v6 = vld [vmem:[%s896_s0 + $0x120] sm:$0xff]  ;;  %v51_v7 = vld [vmem:[%s896_s0 + $0x128] sm:$0xff] }
  0x12   :  { %298 = vst [vmem:[%s899_s3 + $0x70] sm:$0xff] %v234_v9  ;;  %299 = vst [vmem:[%s899_s3 + $0x78] sm:$0xff] %v235_v12  ;;  %v173_v20 = vadd.f32 %v385_v2, %v102_v13  ;;  %v174_v21 = vadd.f32 %v385_v2, %v103_v14  ;;  %v175_v22 = vadd.f32 %v385_v2, %v104_v15  ;;  %v236_v25 = vmax.f32 %v172_v16, 0.0  ;;  %v52_v8 = vld [vmem:[%s896_s0 + $0x130] sm:$0xff]  ;;  %v53_v13 = vld [vmem:[%s896_s0 + $0x138] sm:$0xff] }
  0x13   :  { %v108_v23 = vmul.f32 %v380_v1, %v37_v11  ;;  %v176_v26 = vadd.f32 %v385_v2, %v105_v17  ;;  %v177_v27 = vadd.f32 %v385_v2, %v106_v18  ;;  %v178_v28 = vadd.f32 %v385_v2, %v107_v19 }
  0x14   :  { %v237_v32 = vmax.f32 %v173_v20, 0.0  ;;  %v238_v33 = vmax.f32 %v174_v21, 0.0  ;;  %v239_v34 = vmax.f32 %v175_v22, 0.0  ;;  %300 = vst [vmem:[%s899_s3 + $0x80] sm:$0xff] %v236_v25  ;;  %v109_v42 = vmul.f32 %v380_v1, %v38_v24 }
  0x15   :  { %v179_v35 = vadd.f32 %v385_v2, %v108_v23  ;;  %v240_v39 = vmax.f32 %v176_v26, 0.0  ;;  %v241_v40 = vmax.f32 %v177_v27, 0.0  ;;  %v242_v41 = vmax.f32 %v178_v28, 0.0  ;;  %v54_v26 = vld [vmem:[%s896_s0 + $0x140] sm:$0xff] }
  0x16   :  { %301 = vst [vmem:[%s899_s3 + $0x88] sm:$0xff] %v237_v32  ;;  %302 = vst [vmem:[%s899_s3 + $0x90] sm:$0xff] %v238_v33  ;;  %v110_v45 = vmul.f32 %v380_v1, %v39_v29  ;;  %v111_v46 = vmul.f32 %v380_v1, %v40_v30  ;;  %v112_v47 = vmul.f32 %v380_v1, %v41_v31  ;;  %v55_v31 = vld [vmem:[%s896_s0 + $0x148] sm:$0xff]  ;;  %v56_v32 = vld [vmem:[%s896_s0 + $0x150] sm:$0xff] }
  0x17   :  { %303 = vst [vmem:[%s899_s3 + $0x98] sm:$0xff] %v239_v34  ;;  %v243_v44 = vmax.f32 %v179_v35, 0.0  ;;  %304 = vst [vmem:[%s899_s3 + $0xa0] sm:$0xff] %v240_v39  ;;  %v180_v48 = vadd.f32 %v385_v2, %v109_v42  ;;  %v113_v49 = vmul.f32 %v380_v1, %v42_v36  ;;  %v114_v50 = vmul.f32 %v380_v1, %v43_v37  ;;  %v57_v33 = vld [vmem:[%s896_s0 + $0x158] sm:$0xff]  ;;  %v59_v39 = vld [vmem:[%s896_s0 + $0x168] sm:$0xff] }
  0x18   :  { %305 = vst [vmem:[%s899_s3 + $0xa8] sm:$0xff] %v241_v40  ;;  %306 = vst [vmem:[%s899_s3 + $0xb0] sm:$0xff] %v242_v41  ;;  %v115_v51 = vmul.f32 %v380_v1, %v44_v38  ;;  %v181_v52 = vadd.f32 %v385_v2, %v110_v45  ;;  %v182_v53 = vadd.f32 %v385_v2, %v111_v46  ;;  %v58_v38 = vld [vmem:[%s896_s0 + $0x160] sm:$0xff]  ;;  %v60_v40 = vld [vmem:[%s896_s0 + $0x170] sm:$0xff] }
  0x19   :  { %307 = vst [vmem:[%s899_s3 + $0xb8] sm:$0xff] %v243_v44  ;;  %v183_v54 = vadd.f32 %v385_v2, %v112_v47  ;;  %v116_v55 = vmul.f32 %v380_v1, %v45_v43  ;;  %v244_v57 = vmax.f32 %v180_v48, 0.0  ;;  %v184_v58 = vadd.f32 %v385_v2, %v113_v49  ;;  %v61_v45 = vld [vmem:[%s896_s0 + $0x178] sm:$0xff] }
  0x1a   :  { %v185_v59 = vadd.f32 %v385_v2, %v114_v50  ;;  %v186_v60 = vadd.f32 %v385_v2, %v115_v51  ;;  %v245_v0 = vmax.f32 %v181_v52, 0.0  ;;  %v246_v3 = vmax.f32 %v182_v53, 0.0 }
  0x1b   :  { %v247_v4 = vmax.f32 %v183_v54, 0.0  ;;  %v187_v5 = vadd.f32 %v385_v2, %v116_v55  ;;  %308 = vst [vmem:[%s899_s3 + $0xc0] sm:$0xff] %v244_v57  ;;  %v248_v9 = vmax.f32 %v184_v58, 0.0  ;;  %v117_v12 = vmul.f32 %v380_v1, %v46_v56  ;;  %v62_v58 = vld [vmem:[%s896_s0 + $0x180] sm:$0xff] }
  0x1c   :  { %v249_v10 = vmax.f32 %v185_v59, 0.0  ;;  %v250_v11 = vmax.f32 %v186_v60, 0.0  ;;  %309 = vst [vmem:[%s899_s3 + $0xc8] sm:$0xff] %v245_v0  ;;  %310 = vst [vmem:[%s899_s3 + $0xd0] sm:$0xff] %v246_v3  ;;  %v118_v15 = vmul.f32 %v380_v1, %v47_v61  ;;  %v119_v16 = vmul.f32 %v380_v1, %v48_v62  ;;  %v64_v0 = vld [vmem:[%s896_s0 + $0x190] sm:$0xff]  ;;  %v65_v3 = vld [vmem:[%s896_s0 + $0x198] sm:$0xff] }
  0x1d   :  { %311 = vst [vmem:[%s899_s3 + $0xd8] sm:$0xff] %v247_v4  ;;  %v251_v14 = vmax.f32 %v187_v5, 0.0  ;;  %v120_v17 = vmul.f32 %v380_v1, %v49_v63  ;;  %312 = vst [vmem:[%s899_s3 + $0xe0] sm:$0xff] %v248_v9  ;;  %v188_v18 = vadd.f32 %v385_v2, %v117_v12  ;;  %v121_v19 = vmul.f32 %v380_v1, %v50_v6  ;;  %v63_v63 = vld [vmem:[%s896_s0 + $0x188] sm:$0xff] }
  0x1e   :  { %313 = vst [vmem:[%s899_s3 + $0xe8] sm:$0xff] %v249_v10  ;;  %314 = vst [vmem:[%s899_s3 + $0xf0] sm:$0xff] %v250_v11  ;;  %v122_v20 = vmul.f32 %v380_v1, %v51_v7  ;;  %v123_v21 = vmul.f32 %v380_v1, %v52_v8  ;;  %v189_v22 = vadd.f32 %v385_v2, %v118_v15  ;;  %v66_v8 = vld [vmem:[%s896_s0 + $0x1a0] sm:$0xff]  ;;  %v67_v9 = vld [vmem:[%s896_s0 + $0x1a8] sm:$0xff] }
  0x1f   :  { %315 = vst [vmem:[%s899_s3 + $0xf8] sm:$0xff] %v251_v14  ;;  %v190_v23 = vadd.f32 %v385_v2, %v119_v16  ;;  %v191_v24 = vadd.f32 %v385_v2, %v120_v17  ;;  %v124_v25 = vmul.f32 %v380_v1, %v53_v13  ;;  %v252_v27 = vmax.f32 %v188_v18, 0.0  ;;  %v68_v10 = vld [vmem:[%s896_s0 + $0x1b0] sm:$0xff]  ;;  %v69_v15 = vld [vmem:[%s896_s0 + $0x1b8] sm:$0xff] }
  0x20   :  { %v192_v28 = vadd.f32 %v385_v2, %v121_v19  ;;  %v193_v29 = vadd.f32 %v385_v2, %v122_v20  ;;  %v194_v30 = vadd.f32 %v385_v2, %v123_v21  ;;  %v253_v34 = vmax.f32 %v189_v22, 0.0 }
  0x21   :  { %v254_v35 = vmax.f32 %v190_v23, 0.0  ;;  %v255_v36 = vmax.f32 %v191_v24, 0.0  ;;  %v195_v37 = vadd.f32 %v385_v2, %v124_v25  ;;  %316 = vst [vmem:[%s899_s3 + $0x100] sm:$0xff] %v252_v27  ;;  %v125_v44 = vmul.f32 %v380_v1, %v54_v26 }
  0x22   :  { %v256_v41 = vmax.f32 %v192_v28, 0.0  ;;  %v257_v42 = vmax.f32 %v193_v29, 0.0  ;;  %v258_v43 = vmax.f32 %v194_v30, 0.0  ;;  %317 = vst [vmem:[%s899_s3 + $0x108] sm:$0xff] %v253_v34  ;;  %v126_v47 = vmul.f32 %v380_v1, %v55_v31  ;;  %v70_v28 = vld [vmem:[%s896_s0 + $0x1c0] sm:$0xff]  ;;  %v72_v34 = vld [vmem:[%s896_s0 + $0x1d0] sm:$0xff] }
  0x23   :  { %318 = vst [vmem:[%s899_s3 + $0x110] sm:$0xff] %v254_v35  ;;  %319 = vst [vmem:[%s899_s3 + $0x118] sm:$0xff] %v255_v36  ;;  %v259_v46 = vmax.f32 %v195_v37, 0.0  ;;  %v127_v48 = vmul.f32 %v380_v1, %v56_v32  ;;  %v128_v49 = vmul.f32 %v380_v1, %v57_v33  ;;  %v196_v50 = vadd.f32 %v385_v2, %v125_v44  ;;  %v71_v33 = vld [vmem:[%s896_s0 + $0x1c8] sm:$0xff]  ;;  %v73_v35 = vld [vmem:[%s896_s0 + $0x1d8] sm:$0xff] }
  0x24   :  { %320 = vst [vmem:[%s899_s3 + $0x120] sm:$0xff] %v256_v41  ;;  %321 = vst [vmem:[%s899_s3 + $0x128] sm:$0xff] %v257_v42  ;;  %v129_v51 = vmul.f32 %v380_v1, %v58_v38  ;;  %v130_v52 = vmul.f32 %v380_v1, %v59_v39  ;;  %v131_v53 = vmul.f32 %v380_v1, %v60_v40  ;;  %v74_v40 = vld [vmem:[%s896_s0 + $0x1e0] sm:$0xff]  ;;  %v75_v41 = vld [vmem:[%s896_s0 + $0x1e8] sm:$0xff] }
  0x25   :  { %322 = vst [vmem:[%s899_s3 + $0x130] sm:$0xff] %v258_v43  ;;  %323 = vst [vmem:[%s899_s3 + $0x138] sm:$0xff] %v259_v46  ;;  %v197_v54 = vadd.f32 %v385_v2, %v126_v47  ;;  %v198_v55 = vadd.f32 %v385_v2, %v127_v48  ;;  %v199_v56 = vadd.f32 %v385_v2, %v128_v49  ;;  %v260_v59 = vmax.f32 %v196_v50, 0.0  ;;  %v76_v42 = vld [vmem:[%s896_s0 + $0x1f0] sm:$0xff]  ;;  %v77_v47 = vld [vmem:[%s896_s0 + $0x1f8] sm:$0xff] }
  0x26   :  { %v132_v57 = vmul.f32 %v380_v1, %v61_v45  ;;  %v200_v60 = vadd.f32 %v385_v2, %v129_v51  ;;  %v201_v61 = vadd.f32 %v385_v2, %v130_v52  ;;  %v202_v62 = vadd.f32 %v385_v2, %v131_v53 }
  0x27   :  { %v261_v4 = vmax.f32 %v197_v54, 0.0  ;;  %v262_v5 = vmax.f32 %v198_v55, 0.0  ;;  %v263_v6 = vmax.f32 %v199_v56, 0.0  ;;  %324 = vst [vmem:[%s899_s3 + $0x140] sm:$0xff] %v260_v59  ;;  %v133_v14 = vmul.f32 %v380_v1, %v62_v58 }
  0x28   :  { %v203_v7 = vadd.f32 %v385_v2, %v132_v57  ;;  %v264_v11 = vmax.f32 %v200_v60, 0.0  ;;  %v265_v12 = vmax.f32 %v201_v61, 0.0  ;;  %v266_v13 = vmax.f32 %v202_v62, 0.0 }
  0x29   :  { %325 = vst [vmem:[%s899_s3 + $0x148] sm:$0xff] %v261_v4  ;;  %326 = vst [vmem:[%s899_s3 + $0x150] sm:$0xff] %v262_v5  ;;  %v134_v17 = vmul.f32 %v380_v1, %v63_v63  ;;  %v135_v18 = vmul.f32 %v380_v1, %v64_v0  ;;  %v136_v19 = vmul.f32 %v380_v1, %v65_v3 }
  0x2a   :  { %327 = vst [vmem:[%s899_s3 + $0x158] sm:$0xff] %v263_v6  ;;  %v267_v16 = vmax.f32 %v203_v7, 0.0  ;;  %328 = vst [vmem:[%s899_s3 + $0x160] sm:$0xff] %v264_v11  ;;  %v204_v20 = vadd.f32 %v385_v2, %v133_v14  ;;  %v137_v21 = vmul.f32 %v380_v1, %v66_v8  ;;  %v138_v22 = vmul.f32 %v380_v1, %v67_v9 }
  0x2b   :  { %329 = vst [vmem:[%s899_s3 + $0x168] sm:$0xff] %v265_v12  ;;  %330 = vst [vmem:[%s899_s3 + $0x170] sm:$0xff] %v266_v13  ;;  %v139_v23 = vmul.f32 %v380_v1, %v68_v10  ;;  %v205_v24 = vadd.f32 %v385_v2, %v134_v17  ;;  %v206_v25 = vadd.f32 %v385_v2, %v135_v18 }
  0x2c   :  { %331 = vst [vmem:[%s899_s3 + $0x178] sm:$0xff] %v267_v16  ;;  %v207_v26 = vadd.f32 %v385_v2, %v136_v19  ;;  %v140_v27 = vmul.f32 %v380_v1, %v69_v15  ;;  %v268_v29 = vmax.f32 %v204_v20, 0.0  ;;  %v208_v30 = vadd.f32 %v385_v2, %v137_v21 }
  0x2d   :  { %v209_v31 = vadd.f32 %v385_v2, %v138_v22  ;;  %v210_v32 = vadd.f32 %v385_v2, %v139_v23  ;;  %v269_v36 = vmax.f32 %v205_v24, 0.0  ;;  %v270_v37 = vmax.f32 %v206_v25, 0.0 }
  0x2e   :  { %v271_v38 = vmax.f32 %v207_v26, 0.0  ;;  %v211_v39 = vadd.f32 %v385_v2, %v140_v27  ;;  %332 = vst [vmem:[%s899_s3 + $0x180] sm:$0xff] %v268_v29  ;;  %v272_v43 = vmax.f32 %v208_v30, 0.0  ;;  %v141_v46 = vmul.f32 %v380_v1, %v70_v28 }
  0x2f   :  { %v273_v44 = vmax.f32 %v209_v31, 0.0  ;;  %v274_v45 = vmax.f32 %v210_v32, 0.0  ;;  %333 = vst [vmem:[%s899_s3 + $0x188] sm:$0xff] %v269_v36  ;;  %334 = vst [vmem:[%s899_s3 + $0x190] sm:$0xff] %v270_v37  ;;  %v142_v49 = vmul.f32 %v380_v1, %v71_v33  ;;  %v143_v50 = vmul.f32 %v380_v1, %v72_v34 }
  0x30   :  { %335 = vst [vmem:[%s899_s3 + $0x198] sm:$0xff] %v271_v38  ;;  %v275_v48 = vmax.f32 %v211_v39, 0.0  ;;  %v144_v51 = vmul.f32 %v380_v1, %v73_v35  ;;  %336 = vst [vmem:[%s899_s3 + $0x1a0] sm:$0xff] %v272_v43  ;;  %v212_v52 = vadd.f32 %v385_v2, %v141_v46  ;;  %v145_v53 = vmul.f32 %v380_v1, %v74_v40 }
  0x31   :  { %337 = vst [vmem:[%s899_s3 + $0x1a8] sm:$0xff] %v273_v44  ;;  %338 = vst [vmem:[%s899_s3 + $0x1b0] sm:$0xff] %v274_v45  ;;  %v146_v54 = vmul.f32 %v380_v1, %v75_v41  ;;  %v147_v55 = vmul.f32 %v380_v1, %v76_v42  ;;  %v213_v56 = vadd.f32 %v385_v2, %v142_v49 }
  0x32   :  { %339 = vst [vmem:[%s899_s3 + $0x1b8] sm:$0xff] %v275_v48  ;;  %v214_v57 = vadd.f32 %v385_v2, %v143_v50  ;;  %v215_v58 = vadd.f32 %v385_v2, %v144_v51  ;;  %v148_v59 = vmul.f32 %v380_v1, %v77_v47  ;;  %v276_v60 = vmax.f32 %v212_v52, 0.0 }
  0x33   :  { %v216_v61 = vadd.f32 %v385_v2, %v145_v53  ;;  %v217_v62 = vadd.f32 %v385_v2, %v146_v54  ;;  %v218_v63 = vadd.f32 %v385_v2, %v147_v55  ;;  %v277_v0 = vmax.f32 %v213_v56, 0.0 }
  0x34   :  { %v278_v3 = vmax.f32 %v214_v57, 0.0  ;;  %v279_v4 = vmax.f32 %v215_v58, 0.0  ;;  %v219_v5 = vadd.f32 %v385_v2, %v148_v59  ;;  %340 = vst [vmem:[%s899_s3 + $0x1c0] sm:$0xff] %v276_v60 }
  0x35   :  { %v280_v6 = vmax.f32 %v216_v61, 0.0  ;;  %v281_v7 = vmax.f32 %v217_v62, 0.0  ;;  %v282_v8 = vmax.f32 %v218_v63, 0.0  ;;  %341 = vst [vmem:[%s899_s3 + $0x1c8] sm:$0xff] %v277_v0 }
  0x36   :  { %342 = vst [vmem:[%s899_s3 + $0x1d0] sm:$0xff] %v278_v3  ;;  %343 = vst [vmem:[%s899_s3 + $0x1d8] sm:$0xff] %v279_v4  ;;  %v283_v1 = vmax.f32 %v219_v5, 0.0 }
  0x37   :  { %344 = vst [vmem:[%s899_s3 + $0x1e0] sm:$0xff] %v280_v6  ;;  %345 = vst [vmem:[%s899_s3 + $0x1e8] sm:$0xff] %v281_v7 }
  0x38   :  { %346 = vst [vmem:[%s899_s3 + $0x1f0] sm:$0xff] %v282_v8  ;;  %347 = vst [vmem:[%s899_s3 + $0x1f8] sm:$0xff] %v283_v1 }

</bundles_post_ra>
